<compile_context>
chip_gen: v6e
topology: v6e:2x2x1
jax: 0.10.0
libtpu: 0.0.40
codegen_flags: <defaults>
</compile_context>

<pallas_src>
import functools

import jax
import jax.numpy as jnp
from jax import lax
from jax.experimental import pallas as pl
from jax.experimental.pallas import tpu as pltpu


# ---------------------------------------------------------------------------
# Input projection kernel: Gx = X @ W_ih^T + (b_ih + [b_hr, b_hz, 0])
# One big matmul for all timesteps of a layer (M = T*B).
# ---------------------------------------------------------------------------
def _proj_kernel(x_ref, w_ref, b_ref, o_ref):
    x = x_ref[...].astype(jnp.bfloat16)               # bf16 operands, f32 accum
    acc = jnp.dot(x, w_ref[...], preferred_element_type=jnp.float32)
    o_ref[...] = (acc + b_ref[...]).astype(o_ref.dtype)


def input_projection(x_2d, w_t_bf16, bias_f32):
    """x_2d: (M, Din); w_t_bf16: (Din, 3H) bf16; bias: (1, 3H) f32 -> (M, 3H) f32."""
    M, Din = x_2d.shape
    G = w_t_bf16.shape[1]
    # Tile over M for large inputs; small M runs as a single full block.
    tm = M
    if M > 512:
        for cand in range(512, 7, -8):
            if M % cand == 0:
                tm = cand
                break
    return pl.pallas_call(
        _proj_kernel,
        out_shape=jax.ShapeDtypeStruct((M, G), jnp.float32),
        grid_spec=pltpu.PrefetchScalarGridSpec(
            num_scalar_prefetch=0,
            grid=(M // tm,),
            in_specs=[
                pl.BlockSpec((tm, Din), lambda i: (i, 0)),
                pl.BlockSpec((Din, G), lambda i: (0, 0)),   # grid-invariant weight
                pl.BlockSpec((1, G), lambda i: (0, 0)),
            ],
            out_specs=pl.BlockSpec((tm, G), lambda i: (i, 0)),
        ),
        compiler_params=pltpu.CompilerParams(
            dimension_semantics=("parallel",)),
    )(x_2d, w_t_bf16, bias_f32)


# ---------------------------------------------------------------------------
# GRU recurrence kernel: consumes precomputed Gx, does only h @ W_hh^T per step.
# Processes `tc` timesteps per grid iteration with an unrolled inner loop.
# ---------------------------------------------------------------------------
def _gru_recurrence_kernel(gx_ref, whh_ref, bhn_ref, y_ref, h_ref, *, tc, last_only):
    c = pl.program_id(0)

    @pl.when(c == 0)
    def _():
        h_ref[...] = jnp.zeros_like(h_ref)            # PyTorch default h0 = 0

    H = h_ref.shape[-1]
    whh = whh_ref[...]                                # (H, 3H) bf16, loaded once
    bhn = bhn_ref[...]                                # (1, H) f32

    def step(s, carry):
        h_prev = h_ref[...]                           # (B, H) f32 carried state
        gx = gx_ref[s].astype(jnp.float32)            # (B, 3H): Wih x + bih (+bhr/bhz)
        gh = jnp.dot(h_prev.astype(jnp.bfloat16), whh,
                     preferred_element_type=jnp.float32)       # (B, 3H)
        # gate order (r, z, n); b_hr/b_hz were folded into gx, only b_hn remains.
        # (for H a multiple of 128 these slices are lane-aligned and free)
        r = jax.nn.sigmoid(gx[:, 0 * H:1 * H] + gh[:, 0 * H:1 * H])
        z = jax.nn.sigmoid(gx[:, 1 * H:2 * H] + gh[:, 1 * H:2 * H])
        n = jnp.tanh(gx[:, 2 * H:3 * H] + r * (gh[:, 2 * H:3 * H] + bhn))
        h_new = (1.0 - z) * n + z * h_prev
        h_ref[...] = h_new
        if not last_only:
            y_ref[s] = h_new.astype(y_ref.dtype)
        return carry

    lax.fori_loop(0, tc, step, 0, unroll=True)

    if last_only:
        # Output block maps to the same (B, H) tile for every chunk; only the
        # final chunk's value is what ends up in HBM.
        y_ref[...] = h_ref[...].astype(y_ref.dtype)


def _pick_chunk(T, max_chunk=16):
    for tc in range(min(T, max_chunk), 0, -1):
        if T % tc == 0:
            return tc
    return 1


def gru_layer(x_tbd, w_ih, w_hh, b_ih, b_hh, *, last_only=False, chunk=None):
    """One GRU layer.

    x_tbd : (T, B, Din) time-major input.
    w_ih  : (3H, Din), w_hh: (3H, H), b_ih/b_hh: (3H,)  (PyTorch layout, gate order r,z,n)
    Returns (T, B, H) time-major outputs, or (B, H) final state if last_only.
    """
    T, B, Din = x_tbd.shape
    H = w_hh.shape[1]
    G = 3 * H

    # Hoisted input projection over all timesteps; fold b_ih plus the r/z parts
    # of b_hh into one bias (b_hn must stay inside r * (Whn h + b_hn)).
    bias = (b_ih + b_hh.at[2 * H:].set(0.0)).reshape(1, G)
    gx = input_projection(x_tbd.reshape(T * B, Din),
                          jnp.transpose(w_ih).astype(jnp.bfloat16),
                          bias)                                   # (T*B, 3H) f32
    gx = gx.reshape(T, B, G)

    whh_t = jnp.transpose(w_hh).astype(jnp.bfloat16)              # (H, 3H)
    bhn = b_hh[2 * H:].reshape(1, H)                               # (1, H)

    tc = chunk if chunk is not None else _pick_chunk(T)
    assert T % tc == 0
    grid = (T // tc,)

    kernel = functools.partial(_gru_recurrence_kernel, tc=tc, last_only=last_only)

    if last_only:
        out_shape = jax.ShapeDtypeStruct((B, H), x_tbd.dtype)
        out_spec = pl.BlockSpec((B, H), lambda c: (0, 0))
    else:
        out_shape = jax.ShapeDtypeStruct((T, B, H), x_tbd.dtype)
        out_spec = pl.BlockSpec((tc, B, H), lambda c: (c, 0, 0))

    return pl.pallas_call(
        kernel,
        out_shape=out_shape,
        grid_spec=pltpu.PrefetchScalarGridSpec(
            num_scalar_prefetch=0,
            grid=grid,
            in_specs=[
                pl.BlockSpec((tc, B, G), lambda c: (c, 0, 0)),   # Gx chunk
                pl.BlockSpec((H, G), lambda c: (0, 0)),           # W_hh^T (grid-invariant)
                pl.BlockSpec((1, H), lambda c: (0, 0)),           # b_hn
            ],
            out_specs=out_spec,
            scratch_shapes=[pltpu.VMEM((B, H), jnp.float32)],     # carried hidden state
        ),
        # sequential recurrence along the chunk axis
        compiler_params=pltpu.CompilerParams(
            dimension_semantics=("arbitrary",)),
    )(gx, whh_t, bhn)


# ------------------------------ Linear kernel -------------------------------
def linear_kernel(x_ref, w_ref, b_ref, o_ref):
    o_ref[...] = (jnp.dot(x_ref[...].astype(jnp.float32), w_ref[...],
                          preferred_element_type=jnp.float32)
                  + b_ref[...]).astype(o_ref.dtype)


def linear(x, w_t, b):
    """x: (B, H), w_t: (H, C), b: (1, C) -> (B, C)."""
    B, H = x.shape
    C = w_t.shape[1]
    return pl.pallas_call(
        linear_kernel,
        out_shape=jax.ShapeDtypeStruct((B, C), x.dtype),
        in_specs=[
            pl.BlockSpec((B, H), lambda: (0, 0)),
            pl.BlockSpec((H, C), lambda: (0, 0)),
            pl.BlockSpec((1, C), lambda: (0, 0)),
        ],
        out_specs=pl.BlockSpec((B, C), lambda: (0, 0)),
    )(x, w_t, b)


# ------------------------------ Full model -----------------------------------
def init_params(key, hidden_dim, input_dim, num_layers, num_classes):
    """Deterministic uniform(-1/sqrt(H), 1/sqrt(H)) init, matching PyTorch shapes."""
    params = {"gru": [], "fc": None}
    bound = 1.0 / jnp.sqrt(jnp.float32(hidden_dim))
    for layer in range(num_layers):
        d_in = input_dim if layer == 0 else hidden_dim
        key, k1, k2, k3, k4 = jax.random.split(key, 5)
        w_ih = jax.random.uniform(k1, (3 * hidden_dim, d_in), jnp.float32, -bound, bound)
        w_hh = jax.random.uniform(k2, (3 * hidden_dim, hidden_dim), jnp.float32, -bound, bound)
        b_ih = jax.random.uniform(k3, (3 * hidden_dim,), jnp.float32, -bound, bound)
        b_hh = jax.random.uniform(k4, (3 * hidden_dim,), jnp.float32, -bound, bound)
        params["gru"].append((w_ih, w_hh, b_ih, b_hh))
    key, k1, k2 = jax.random.split(key, 3)
    fc_bound = 1.0 / jnp.sqrt(jnp.float32(hidden_dim))
    w_fc = jax.random.uniform(k1, (num_classes, hidden_dim), jnp.float32, -fc_bound, fc_bound)
    b_fc = jax.random.uniform(k2, (num_classes,), jnp.float32, -fc_bound, fc_bound)
    params["fc"] = (w_fc, b_fc)
    return params


def gru_model_forward(params, x):
    """x: (B, T, input_dim), batch_first like PyTorch. Returns (B, num_classes)."""
    h = jnp.transpose(x, (1, 0, 2))                   # one small transpose to time-major
    n_layers = len(params["gru"])
    for li, (w_ih, w_hh, b_ih, b_hh) in enumerate(params["gru"]):
        h = gru_layer(h, w_ih, w_hh, b_ih, b_hh,
                      last_only=(li == n_layers - 1))  # last layer -> (B, H) only
    w_fc, b_fc = params["fc"]
    return linear(h, jnp.transpose(w_fc), b_fc.reshape(1, -1))   # (B, num_classes)


if __name__ == "__main__":
    batch, seq_len = 2, 8
    input_dim, hidden_dim, num_layers, num_classes = 16, 32, 2, 4

    key = jax.random.PRNGKey(0)
    key, xkey = jax.random.split(key)
    x = jax.random.normal(xkey, (batch, seq_len, input_dim), jnp.float32)

    params = init_params(key, hidden_dim, input_dim, num_layers, num_classes)

    fwd = jax.jit(gru_model_forward)
    out = fwd(params, x)
    jax.block_until_ready(out)
    assert out.shape == (batch, num_classes), out.shape
    print("KERNEL_OK")
</pallas_src>

<mosaic_0001>
module attributes {stable_mosaic.version = 11 : i64} {
  func.func @_proj_kernel(%arg0: i32, %arg1: memref<16x16xf32, #tpu.memory_space<vmem>>, %arg2: memref<16x96xbf16, #tpu.memory_space<vmem>>, %arg3: memref<1x96xf32, #tpu.memory_space<vmem>>, %arg4: memref<16x96xf32, #tpu.memory_space<vmem>>) attributes {dimension_semantics = [#tpu.dimension_semantics<parallel>], iteration_bounds = array<i64: 1>, scalar_prefetch = 0 : i64, scratch_operands = 0 : i64, tpu.core_type = #tpu.core_type<tc>, window_params = [{transform_indices = @transform_0, window_bounds = array<i64: 16, 16>}, {pipeline_mode = #tpu.pipeline_mode<synchronous>, transform_indices = @transform_1, window_bounds = array<i64: 16, 96>}, {pipeline_mode = #tpu.pipeline_mode<synchronous>, transform_indices = @transform_2, window_bounds = array<i64: 1, 96>}, {transform_indices = @transform_3, window_bounds = array<i64: 16, 96>}]} {
    %c0 = arith.constant 0 : index
    %c0_0 = arith.constant 0 : index
    %0 = vector.load %arg1[%c0, %c0_0] : memref<16x16xf32, #tpu.memory_space<vmem>>, vector<16x16xf32>
    %1 = arith.truncf %0 : vector<16x16xf32> to vector<16x16xbf16>
    %c0_1 = arith.constant 0 : index
    %c0_2 = arith.constant 0 : index
    %2 = vector.load %arg2[%c0_1, %c0_2] : memref<16x96xbf16, #tpu.memory_space<vmem>>, vector<16x96xbf16>
    %cst = arith.constant dense<0.000000e+00> : vector<16x96xf32>
    %3 = tpu.matmul %1, %2, %cst {dimension_numbers = #tpu.dot_dimension_numbers<[1], [0], [0], [1], [0, 0, 1, 1], [], []>} : vector<16x16xbf16>, vector<16x96xbf16>, vector<16x96xf32> -> vector<16x96xf32>
    %c0_3 = arith.constant 0 : index
    %c0_4 = arith.constant 0 : index
    %4 = vector.load %arg3[%c0_3, %c0_4] : memref<1x96xf32, #tpu.memory_space<vmem>>, vector<1x96xf32>
    %5 = vector.broadcast %4 : vector<1x96xf32> to vector<16x96xf32>
    %6 = arith.addf %3, %5 : vector<16x96xf32>
    %c0_5 = arith.constant 0 : index
    %c0_6 = arith.constant 0 : index
    %7 = vector.load %arg4[%c0_5, %c0_6] : memref<16x96xf32, #tpu.memory_space<vmem>>, vector<16x96xf32>
    tpu.vector_store %arg4[%c0_5, %c0_6], %6 {strides = array<i32>} : memref<16x96xf32, #tpu.memory_space<vmem>>, vector<16x96xf32>,
    return
  }
  func.func @transform_0(%arg0: i32) -> (i32, i32) {
    %c0_i32 = arith.constant 0 : i32
    %c0_i32_0 = arith.constant 0 : i32
    return %arg0, %c0_i32 : i32, i32
  }
  func.func @transform_1(%arg0: i32) -> (i32, i32) {
    %c0_i32 = arith.constant 0 : i32
    %c0_i32_0 = arith.constant 0 : i32
    %c0_i32_1 = arith.constant 0 : i32
    return %c0_i32, %c0_i32_0 : i32, i32
  }
  func.func @transform_2(%arg0: i32) -> (i32, i32) {
    %c0_i32 = arith.constant 0 : i32
    %c0_i32_0 = arith.constant 0 : i32
    %c0_i32_1 = arith.constant 0 : i32
    return %c0_i32, %c0_i32_0 : i32, i32
  }
  func.func @transform_3(%arg0: i32) -> (i32, i32) {
    %c0_i32 = arith.constant 0 : i32
    %c0_i32_0 = arith.constant 0 : i32
    return %arg0, %c0_i32 : i32, i32
  }
}

module attributes {stable_mosaic.version = 11 : i64} {
  func.func @_proj_kernel(%arg0: i32, %arg1: memref<16x32xf32, #tpu.memory_space<vmem>>, %arg2: memref<32x96xbf16, #tpu.memory_space<vmem>>, %arg3: memref<1x96xf32, #tpu.memory_space<vmem>>, %arg4: memref<16x96xf32, #tpu.memory_space<vmem>>) attributes {dimension_semantics = [#tpu.dimension_semantics<parallel>], iteration_bounds = array<i64: 1>, scalar_prefetch = 0 : i64, scratch_operands = 0 : i64, tpu.core_type = #tpu.core_type<tc>, window_params = [{transform_indices = @transform_0, window_bounds = array<i64: 16, 32>}, {pipeline_mode = #tpu.pipeline_mode<synchronous>, transform_indices = @transform_1, window_bounds = array<i64: 32, 96>}, {pipeline_mode = #tpu.pipeline_mode<synchronous>, transform_indices = @transform_2, window_bounds = array<i64: 1, 96>}, {transform_indices = @transform_3, window_bounds = array<i64: 16, 96>}]} {
    %c0 = arith.constant 0 : index
    %c0_0 = arith.constant 0 : index
    %0 = vector.load %arg1[%c0, %c0_0] : memref<16x32xf32, #tpu.memory_space<vmem>>, vector<16x32xf32>
    %1 = arith.truncf %0 : vector<16x32xf32> to vector<16x32xbf16>
    %c0_1 = arith.constant 0 : index
    %c0_2 = arith.constant 0 : index
    %2 = vector.load %arg2[%c0_1, %c0_2] : memref<32x96xbf16, #tpu.memory_space<vmem>>, vector<32x96xbf16>
    %cst = arith.constant dense<0.000000e+00> : vector<16x96xf32>
    %3 = tpu.matmul %1, %2, %cst {dimension_numbers = #tpu.dot_dimension_numbers<[1], [0], [0], [1], [0, 0, 1, 1], [], []>} : vector<16x32xbf16>, vector<32x96xbf16>, vector<16x96xf32> -> vector<16x96xf32>
    %c0_3 = arith.constant 0 : index
    %c0_4 = arith.constant 0 : index
    %4 = vector.load %arg3[%c0_3, %c0_4] : memref<1x96xf32, #tpu.memory_space<vmem>>, vector<1x96xf32>
    %5 = vector.broadcast %4 : vector<1x96xf32> to vector<16x96xf32>
    %6 = arith.addf %3, %5 : vector<16x96xf32>
    %c0_5 = arith.constant 0 : index
    %c0_6 = arith.constant 0 : index
    %7 = vector.load %arg4[%c0_5, %c0_6] : memref<16x96xf32, #tpu.memory_space<vmem>>, vector<16x96xf32>
    tpu.vector_store %arg4[%c0_5, %c0_6], %6 {strides = array<i32>} : memref<16x96xf32, #tpu.memory_space<vmem>>, vector<16x96xf32>,
    return
  }
  func.func @transform_0(%arg0: i32) -> (i32, i32) {
    %c0_i32 = arith.constant 0 : i32
    %c0_i32_0 = arith.constant 0 : i32
    return %arg0, %c0_i32 : i32, i32
  }
  func.func @transform_1(%arg0: i32) -> (i32, i32) {
    %c0_i32 = arith.constant 0 : i32
    %c0_i32_0 = arith.constant 0 : i32
    %c0_i32_1 = arith.constant 0 : i32
    return %c0_i32, %c0_i32_0 : i32, i32
  }
  func.func @transform_2(%arg0: i32) -> (i32, i32) {
    %c0_i32 = arith.constant 0 : i32
    %c0_i32_0 = arith.constant 0 : i32
    %c0_i32_1 = arith.constant 0 : i32
    return %c0_i32, %c0_i32_0 : i32, i32
  }
  func.func @transform_3(%arg0: i32) -> (i32, i32) {
    %c0_i32 = arith.constant 0 : i32
    %c0_i32_0 = arith.constant 0 : i32
    return %arg0, %c0_i32 : i32, i32
  }
}

module attributes {stable_mosaic.version = 11 : i64} {
  func.func @_gru_recurrence_kernel(%arg0: i32, %arg1: memref<8x2x96xf32, #tpu.memory_space<vmem>>, %arg2: memref<32x96xbf16, #tpu.memory_space<vmem>>, %arg3: memref<1x32xf32, #tpu.memory_space<vmem>>, %arg4: memref<8x2x32xf32, #tpu.memory_space<vmem>>, %arg5: memref<2x32xf32, #tpu.memory_space<vmem>>) attributes {dimension_semantics = [#tpu.dimension_semantics<arbitrary>], iteration_bounds = array<i64: 1>, scalar_prefetch = 0 : i64, scratch_operands = 1 : i64, tpu.core_type = #tpu.core_type<tc>, window_params = [{transform_indices = @transform_0, window_bounds = array<i64: 8, 2, 96>}, {pipeline_mode = #tpu.pipeline_mode<synchronous>, transform_indices = @transform_1, window_bounds = array<i64: 32, 96>}, {pipeline_mode = #tpu.pipeline_mode<synchronous>, transform_indices = @transform_2, window_bounds = array<i64: 1, 32>}, {transform_indices = @transform_3, window_bounds = array<i64: 8, 2, 32>}]} {
    %c0_i32 = arith.constant 0 : i32
    %0 = arith.cmpi eq, %arg0, %c0_i32 : i32
    %1 = arith.extui %0 : i1 to i32
    %c0_i32_0 = arith.constant 0 : i32
    %2 = arith.cmpi ne, %1, %c0_i32_0 : i32
    scf.if %2 {
      %cst_100 = arith.constant 0.000000e+00 : f32
      %317 = vector.broadcast %cst_100 : f32 to vector<2x32xf32>
      %c0_101 = arith.constant 0 : index
      %c0_102 = arith.constant 0 : index
      %318 = vector.load %arg5[%c0_101, %c0_102] : memref<2x32xf32, #tpu.memory_space<vmem>>, vector<2x32xf32>
      tpu.vector_store %arg5[%c0_101, %c0_102], %317 {strides = array<i32>} : memref<2x32xf32, #tpu.memory_space<vmem>>, vector<2x32xf32>,
    } else {
    }
    %c0 = arith.constant 0 : index
    %c0_1 = arith.constant 0 : index
    %3 = vector.load %arg2[%c0, %c0_1] : memref<32x96xbf16, #tpu.memory_space<vmem>>, vector<32x96xbf16>
    %c0_2 = arith.constant 0 : index
    %c0_3 = arith.constant 0 : index
    %4 = vector.load %arg3[%c0_2, %c0_3] : memref<1x32xf32, #tpu.memory_space<vmem>>, vector<1x32xf32>
    %c0_i32_4 = arith.constant 0 : i32
    %c0_5 = arith.constant 0 : index
    %c0_6 = arith.constant 0 : index
    %5 = vector.load %arg5[%c0_5, %c0_6] : memref<2x32xf32, #tpu.memory_space<vmem>>, vector<2x32xf32>
    %6 = arith.index_cast %c0_i32_4 : i32 to index
    %c0_7 = arith.constant 0 : index
    %c0_8 = arith.constant 0 : index
    %7 = vector.load %arg1[%6, %c0_7, %c0_8] : memref<8x2x96xf32, #tpu.memory_space<vmem>>, vector<1x2x96xf32>
    %8 = vector.shape_cast %7 : vector<1x2x96xf32> to vector<2x96xf32>
    %9 = arith.truncf %5 : vector<2x32xf32> to vector<2x32xbf16>
    %cst = arith.constant dense<0.000000e+00> : vector<2x96xf32>
    %10 = tpu.matmul %9, %3, %cst {dimension_numbers = #tpu.dot_dimension_numbers<[1], [0], [0], [1], [0, 0, 1, 1], [], []>} : vector<2x32xbf16>, vector<32x96xbf16>, vector<2x96xf32> -> vector<2x96xf32>
    %11 = vector.extract_strided_slice %8 {offsets = [0, 0], sizes = [2, 32], strides = [1, 1]} : vector<2x96xf32> to vector<2x32xf32>
    %12 = vector.extract_strided_slice %10 {offsets = [0, 0], sizes = [2, 32], strides = [1, 1]} : vector<2x96xf32> to vector<2x32xf32>
    %13 = arith.addf %11, %12 : vector<2x32xf32>
    %14 = arith.negf %13 : vector<2x32xf32>
    %15 = math.exp %14 : vector<2x32xf32>
    %cst_9 = arith.constant 1.000000e+00 : f32
    %16 = vector.broadcast %cst_9 : f32 to vector<2x32xf32>
    %17 = arith.addf %16, %15 : vector<2x32xf32>
    %18 = arith.divf %16, %17 : vector<2x32xf32>
    %19 = vector.extract_strided_slice %8 {offsets = [0, 32], sizes = [2, 32], strides = [1, 1]} : vector<2x96xf32> to vector<2x32xf32>
    %20 = vector.extract_strided_slice %10 {offsets = [0, 32], sizes = [2, 32], strides = [1, 1]} : vector<2x96xf32> to vector<2x32xf32>
    %21 = arith.addf %19, %20 : vector<2x32xf32>
    %22 = arith.negf %21 : vector<2x32xf32>
    %23 = math.exp %22 : vector<2x32xf32>
    %cst_10 = arith.constant 1.000000e+00 : f32
    %24 = vector.broadcast %cst_10 : f32 to vector<2x32xf32>
    %25 = arith.addf %24, %23 : vector<2x32xf32>
    %26 = arith.divf %24, %25 : vector<2x32xf32>
    %27 = vector.extract_strided_slice %8 {offsets = [0, 64], sizes = [2, 32], strides = [1, 1]} : vector<2x96xf32> to vector<2x32xf32>
    %28 = vector.extract_strided_slice %10 {offsets = [0, 64], sizes = [2, 32], strides = [1, 1]} : vector<2x96xf32> to vector<2x32xf32>
    %29 = vector.broadcast %4 : vector<1x32xf32> to vector<2x32xf32>
    %30 = arith.addf %28, %29 : vector<2x32xf32>
    %31 = arith.mulf %18, %30 : vector<2x32xf32>
    %32 = arith.addf %27, %31 : vector<2x32xf32>
    %33 = math.tanh %32 : vector<2x32xf32>
    %cst_11 = arith.constant 1.000000e+00 : f32
    %34 = vector.broadcast %cst_11 : f32 to vector<2x32xf32>
    %35 = arith.subf %34, %26 : vector<2x32xf32>
    %36 = arith.mulf %35, %33 : vector<2x32xf32>
    %37 = arith.mulf %26, %5 : vector<2x32xf32>
    %38 = arith.addf %36, %37 : vector<2x32xf32>
    %c0_12 = arith.constant 0 : index
    %c0_13 = arith.constant 0 : index
    %39 = vector.load %arg5[%c0_12, %c0_13] : memref<2x32xf32, #tpu.memory_space<vmem>>, vector<2x32xf32>
    tpu.vector_store %arg5[%c0_12, %c0_13], %38 {strides = array<i32>} : memref<2x32xf32, #tpu.memory_space<vmem>>, vector<2x32xf32>,
    %40 = arith.index_cast %c0_i32_4 : i32 to index
    %c0_14 = arith.constant 0 : index
    %c0_15 = arith.constant 0 : index
    %41 = vector.load %arg4[%40, %c0_14, %c0_15] : memref<8x2x32xf32, #tpu.memory_space<vmem>>, vector<1x2x32xf32>
    %42 = vector.shape_cast %41 : vector<1x2x32xf32> to vector<2x32xf32>
    %43 = vector.shape_cast %38 : vector<2x32xf32> to vector<1x2x32xf32>
    tpu.vector_store %arg4[%40, %c0_14, %c0_15], %43 {strides = array<i32>} : memref<8x2x32xf32, #tpu.memory_space<vmem>>, vector<1x2x32xf32>,
    %c1_i32 = arith.constant 1 : i32
    %c0_16 = arith.constant 0 : index
    %c0_17 = arith.constant 0 : index
    %44 = vector.load %arg5[%c0_16, %c0_17] : memref<2x32xf32, #tpu.memory_space<vmem>>, vector<2x32xf32>
    %45 = arith.index_cast %c1_i32 : i32 to index
    %c0_18 = arith.constant 0 : index
    %c0_19 = arith.constant 0 : index
    %46 = vector.load %arg1[%45, %c0_18, %c0_19] : memref<8x2x96xf32, #tpu.memory_space<vmem>>, vector<1x2x96xf32>
    %47 = vector.shape_cast %46 : vector<1x2x96xf32> to vector<2x96xf32>
    %48 = arith.truncf %44 : vector<2x32xf32> to vector<2x32xbf16>
    %cst_20 = arith.constant dense<0.000000e+00> : vector<2x96xf32>
    %49 = tpu.matmul %48, %3, %cst_20 {dimension_numbers = #tpu.dot_dimension_numbers<[1], [0], [0], [1], [0, 0, 1, 1], [], []>} : vector<2x32xbf16>, vector<32x96xbf16>, vector<2x96xf32> -> vector<2x96xf32>
    %50 = vector.extract_strided_slice %47 {offsets = [0, 0], sizes = [2, 32], strides = [1, 1]} : vector<2x96xf32> to vector<2x32xf32>
    %51 = vector.extract_strided_slice %49 {offsets = [0, 0], sizes = [2, 32], strides = [1, 1]} : vector<2x96xf32> to vector<2x32xf32>
    %52 = arith.addf %50, %51 : vector<2x32xf32>
    %53 = arith.negf %52 : vector<2x32xf32>
    %54 = math.exp %53 : vector<2x32xf32>
    %cst_21 = arith.constant 1.000000e+00 : f32
    %55 = vector.broadcast %cst_21 : f32 to vector<2x32xf32>
    %56 = arith.addf %55, %54 : vector<2x32xf32>
    %57 = arith.divf %55, %56 : vector<2x32xf32>
    %58 = vector.extract_strided_slice %47 {offsets = [0, 32], sizes = [2, 32], strides = [1, 1]} : vector<2x96xf32> to vector<2x32xf32>
    %59 = vector.extract_strided_slice %49 {offsets = [0, 32], sizes = [2, 32], strides = [1, 1]} : vector<2x96xf32> to vector<2x32xf32>
    %60 = arith.addf %58, %59 : vector<2x32xf32>
    %61 = arith.negf %60 : vector<2x32xf32>
    %62 = math.exp %61 : vector<2x32xf32>
    %cst_22 = arith.constant 1.000000e+00 : f32
    %63 = vector.broadcast %cst_22 : f32 to vector<2x32xf32>
    %64 = arith.addf %63, %62 : vector<2x32xf32>
    %65 = arith.divf %63, %64 : vector<2x32xf32>
    %66 = vector.extract_strided_slice %47 {offsets = [0, 64], sizes = [2, 32], strides = [1, 1]} : vector<2x96xf32> to vector<2x32xf32>
    %67 = vector.extract_strided_slice %49 {offsets = [0, 64], sizes = [2, 32], strides = [1, 1]} : vector<2x96xf32> to vector<2x32xf32>
    %68 = vector.broadcast %4 : vector<1x32xf32> to vector<2x32xf32>
    %69 = arith.addf %67, %68 : vector<2x32xf32>
    %70 = arith.mulf %57, %69 : vector<2x32xf32>
    %71 = arith.addf %66, %70 : vector<2x32xf32>
    %72 = math.tanh %71 : vector<2x32xf32>
    %cst_23 = arith.constant 1.000000e+00 : f32
    %73 = vector.broadcast %cst_23 : f32 to vector<2x32xf32>
    %74 = arith.subf %73, %65 : vector<2x32xf32>
    %75 = arith.mulf %74, %72 : vector<2x32xf32>
    %76 = arith.mulf %65, %44 : vector<2x32xf32>
    %77 = arith.addf %75, %76 : vector<2x32xf32>
    %c0_24 = arith.constant 0 : index
    %c0_25 = arith.constant 0 : index
    %78 = vector.load %arg5[%c0_24, %c0_25] : memref<2x32xf32, #tpu.memory_space<vmem>>, vector<2x32xf32>
    tpu.vector_store %arg5[%c0_24, %c0_25], %77 {strides = array<i32>} : memref<2x32xf32, #tpu.memory_space<vmem>>, vector<2x32xf32>,
    %79 = arith.index_cast %c1_i32 : i32 to index
    %c0_26 = arith.constant 0 : index
    %c0_27 = arith.constant 0 : index
    %80 = vector.load %arg4[%79, %c0_26, %c0_27] : memref<8x2x32xf32, #tpu.memory_space<vmem>>, vector<1x2x32xf32>
    %81 = vector.shape_cast %80 : vector<1x2x32xf32> to vector<2x32xf32>
    %82 = vector.shape_cast %77 : vector<2x32xf32> to vector<1x2x32xf32>
    tpu.vector_store %arg4[%79, %c0_26, %c0_27], %82 {strides = array<i32>} : memref<8x2x32xf32, #tpu.memory_space<vmem>>, vector<1x2x32xf32>,
    %c2_i32 = arith.constant 2 : i32
    %c0_28 = arith.constant 0 : index
    %c0_29 = arith.constant 0 : index
    %83 = vector.load %arg5[%c0_28, %c0_29] : memref<2x32xf32, #tpu.memory_space<vmem>>, vector<2x32xf32>
    %84 = arith.index_cast %c2_i32 : i32 to index
    %c0_30 = arith.constant 0 : index
    %c0_31 = arith.constant 0 : index
    %85 = vector.load %arg1[%84, %c0_30, %c0_31] : memref<8x2x96xf32, #tpu.memory_space<vmem>>, vector<1x2x96xf32>
    %86 = vector.shape_cast %85 : vector<1x2x96xf32> to vector<2x96xf32>
    %87 = arith.truncf %83 : vector<2x32xf32> to vector<2x32xbf16>
    %cst_32 = arith.constant dense<0.000000e+00> : vector<2x96xf32>
    %88 = tpu.matmul %87, %3, %cst_32 {dimension_numbers = #tpu.dot_dimension_numbers<[1], [0], [0], [1], [0, 0, 1, 1], [], []>} : vector<2x32xbf16>, vector<32x96xbf16>, vector<2x96xf32> -> vector<2x96xf32>
    %89 = vector.extract_strided_slice %86 {offsets = [0, 0], sizes = [2, 32], strides = [1, 1]} : vector<2x96xf32> to vector<2x32xf32>
    %90 = vector.extract_strided_slice %88 {offsets = [0, 0], sizes = [2, 32], strides = [1, 1]} : vector<2x96xf32> to vector<2x32xf32>
    %91 = arith.addf %89, %90 : vector<2x32xf32>
    %92 = arith.negf %91 : vector<2x32xf32>
    %93 = math.exp %92 : vector<2x32xf32>
    %cst_33 = arith.constant 1.000000e+00 : f32
    %94 = vector.broadcast %cst_33 : f32 to vector<2x32xf32>
    %95 = arith.addf %94, %93 : vector<2x32xf32>
    %96 = arith.divf %94, %95 : vector<2x32xf32>
    %97 = vector.extract_strided_slice %86 {offsets = [0, 32], sizes = [2, 32], strides = [1, 1]} : vector<2x96xf32> to vector<2x32xf32>
    %98 = vector.extract_strided_slice %88 {offsets = [0, 32], sizes = [2, 32], strides = [1, 1]} : vector<2x96xf32> to vector<2x32xf32>
    %99 = arith.addf %97, %98 : vector<2x32xf32>
    %100 = arith.negf %99 : vector<2x32xf32>
    %101 = math.exp %100 : vector<2x32xf32>
    %cst_34 = arith.constant 1.000000e+00 : f32
    %102 = vector.broadcast %cst_34 : f32 to vector<2x32xf32>
    %103 = arith.addf %102, %101 : vector<2x32xf32>
    %104 = arith.divf %102, %103 : vector<2x32xf32>
    %105 = vector.extract_strided_slice %86 {offsets = [0, 64], sizes = [2, 32], strides = [1, 1]} : vector<2x96xf32> to vector<2x32xf32>
    %106 = vector.extract_strided_slice %88 {offsets = [0, 64], sizes = [2, 32], strides = [1, 1]} : vector<2x96xf32> to vector<2x32xf32>
    %107 = vector.broadcast %4 : vector<1x32xf32> to vector<2x32xf32>
    %108 = arith.addf %106, %107 : vector<2x32xf32>
    %109 = arith.mulf %96, %108 : vector<2x32xf32>
    %110 = arith.addf %105, %109 : vector<2x32xf32>
    %111 = math.tanh %110 : vector<2x32xf32>
    %cst_35 = arith.constant 1.000000e+00 : f32
    %112 = vector.broadcast %cst_35 : f32 to vector<2x32xf32>
    %113 = arith.subf %112, %104 : vector<2x32xf32>
    %114 = arith.mulf %113, %111 : vector<2x32xf32>
    %115 = arith.mulf %104, %83 : vector<2x32xf32>
    %116 = arith.addf %114, %115 : vector<2x32xf32>
    %c0_36 = arith.constant 0 : index
    %c0_37 = arith.constant 0 : index
    %117 = vector.load %arg5[%c0_36, %c0_37] : memref<2x32xf32, #tpu.memory_space<vmem>>, vector<2x32xf32>
    tpu.vector_store %arg5[%c0_36, %c0_37], %116 {strides = array<i32>} : memref<2x32xf32, #tpu.memory_space<vmem>>, vector<2x32xf32>,
    %118 = arith.index_cast %c2_i32 : i32 to index
    %c0_38 = arith.constant 0 : index
    %c0_39 = arith.constant 0 : index
    %119 = vector.load %arg4[%118, %c0_38, %c0_39] : memref<8x2x32xf32, #tpu.memory_space<vmem>>, vector<1x2x32xf32>
    %120 = vector.shape_cast %119 : vector<1x2x32xf32> to vector<2x32xf32>
    %121 = vector.shape_cast %116 : vector<2x32xf32> to vector<1x2x32xf32>
    tpu.vector_store %arg4[%118, %c0_38, %c0_39], %121 {strides = array<i32>} : memref<8x2x32xf32, #tpu.memory_space<vmem>>, vector<1x2x32xf32>,
    %c3_i32 = arith.constant 3 : i32
    %c0_40 = arith.constant 0 : index
    %c0_41 = arith.constant 0 : index
    %122 = vector.load %arg5[%c0_40, %c0_41] : memref<2x32xf32, #tpu.memory_space<vmem>>, vector<2x32xf32>
    %123 = arith.index_cast %c3_i32 : i32 to index
    %c0_42 = arith.constant 0 : index
    %c0_43 = arith.constant 0 : index
    %124 = vector.load %arg1[%123, %c0_42, %c0_43] : memref<8x2x96xf32, #tpu.memory_space<vmem>>, vector<1x2x96xf32>
    %125 = vector.shape_cast %124 : vector<1x2x96xf32> to vector<2x96xf32>
    %126 = arith.truncf %122 : vector<2x32xf32> to vector<2x32xbf16>
    %cst_44 = arith.constant dense<0.000000e+00> : vector<2x96xf32>
    %127 = tpu.matmul %126, %3, %cst_44 {dimension_numbers = #tpu.dot_dimension_numbers<[1], [0], [0], [1], [0, 0, 1, 1], [], []>} : vector<2x32xbf16>, vector<32x96xbf16>, vector<2x96xf32> -> vector<2x96xf32>
    %128 = vector.extract_strided_slice %125 {offsets = [0, 0], sizes = [2, 32], strides = [1, 1]} : vector<2x96xf32> to vector<2x32xf32>
    %129 = vector.extract_strided_slice %127 {offsets = [0, 0], sizes = [2, 32], strides = [1, 1]} : vector<2x96xf32> to vector<2x32xf32>
    %130 = arith.addf %128, %129 : vector<2x32xf32>
    %131 = arith.negf %130 : vector<2x32xf32>
    %132 = math.exp %131 : vector<2x32xf32>
    %cst_45 = arith.constant 1.000000e+00 : f32
    %133 = vector.broadcast %cst_45 : f32 to vector<2x32xf32>
    %134 = arith.addf %133, %132 : vector<2x32xf32>
    %135 = arith.divf %133, %134 : vector<2x32xf32>
    %136 = vector.extract_strided_slice %125 {offsets = [0, 32], sizes = [2, 32], strides = [1, 1]} : vector<2x96xf32> to vector<2x32xf32>
    %137 = vector.extract_strided_slice %127 {offsets = [0, 32], sizes = [2, 32], strides = [1, 1]} : vector<2x96xf32> to vector<2x32xf32>
    %138 = arith.addf %136, %137 : vector<2x32xf32>
    %139 = arith.negf %138 : vector<2x32xf32>
    %140 = math.exp %139 : vector<2x32xf32>
    %cst_46 = arith.constant 1.000000e+00 : f32
    %141 = vector.broadcast %cst_46 : f32 to vector<2x32xf32>
    %142 = arith.addf %141, %140 : vector<2x32xf32>
    %143 = arith.divf %141, %142 : vector<2x32xf32>
    %144 = vector.extract_strided_slice %125 {offsets = [0, 64], sizes = [2, 32], strides = [1, 1]} : vector<2x96xf32> to vector<2x32xf32>
    %145 = vector.extract_strided_slice %127 {offsets = [0, 64], sizes = [2, 32], strides = [1, 1]} : vector<2x96xf32> to vector<2x32xf32>
    %146 = vector.broadcast %4 : vector<1x32xf32> to vector<2x32xf32>
    %147 = arith.addf %145, %146 : vector<2x32xf32>
    %148 = arith.mulf %135, %147 : vector<2x32xf32>
    %149 = arith.addf %144, %148 : vector<2x32xf32>
    %150 = math.tanh %149 : vector<2x32xf32>
    %cst_47 = arith.constant 1.000000e+00 : f32
    %151 = vector.broadcast %cst_47 : f32 to vector<2x32xf32>
    %152 = arith.subf %151, %143 : vector<2x32xf32>
    %153 = arith.mulf %152, %150 : vector<2x32xf32>
    %154 = arith.mulf %143, %122 : vector<2x32xf32>
    %155 = arith.addf %153, %154 : vector<2x32xf32>
    %c0_48 = arith.constant 0 : index
    %c0_49 = arith.constant 0 : index
    %156 = vector.load %arg5[%c0_48, %c0_49] : memref<2x32xf32, #tpu.memory_space<vmem>>, vector<2x32xf32>
    tpu.vector_store %arg5[%c0_48, %c0_49], %155 {strides = array<i32>} : memref<2x32xf32, #tpu.memory_space<vmem>>, vector<2x32xf32>,
    %157 = arith.index_cast %c3_i32 : i32 to index
    %c0_50 = arith.constant 0 : index
    %c0_51 = arith.constant 0 : index
    %158 = vector.load %arg4[%157, %c0_50, %c0_51] : memref<8x2x32xf32, #tpu.memory_space<vmem>>, vector<1x2x32xf32>
    %159 = vector.shape_cast %158 : vector<1x2x32xf32> to vector<2x32xf32>
    %160 = vector.shape_cast %155 : vector<2x32xf32> to vector<1x2x32xf32>
    tpu.vector_store %arg4[%157, %c0_50, %c0_51], %160 {strides = array<i32>} : memref<8x2x32xf32, #tpu.memory_space<vmem>>, vector<1x2x32xf32>,
    %c4_i32 = arith.constant 4 : i32
    %c0_52 = arith.constant 0 : index
    %c0_53 = arith.constant 0 : index
    %161 = vector.load %arg5[%c0_52, %c0_53] : memref<2x32xf32, #tpu.memory_space<vmem>>, vector<2x32xf32>
    %162 = arith.index_cast %c4_i32 : i32 to index
    %c0_54 = arith.constant 0 : index
    %c0_55 = arith.constant 0 : index
    %163 = vector.load %arg1[%162, %c0_54, %c0_55] : memref<8x2x96xf32, #tpu.memory_space<vmem>>, vector<1x2x96xf32>
    %164 = vector.shape_cast %163 : vector<1x2x96xf32> to vector<2x96xf32>
    %165 = arith.truncf %161 : vector<2x32xf32> to vector<2x32xbf16>
    %cst_56 = arith.constant dense<0.000000e+00> : vector<2x96xf32>
    %166 = tpu.matmul %165, %3, %cst_56 {dimension_numbers = #tpu.dot_dimension_numbers<[1], [0], [0], [1], [0, 0, 1, 1], [], []>} : vector<2x32xbf16>, vector<32x96xbf16>, vector<2x96xf32> -> vector<2x96xf32>
    %167 = vector.extract_strided_slice %164 {offsets = [0, 0], sizes = [2, 32], strides = [1, 1]} : vector<2x96xf32> to vector<2x32xf32>
    %168 = vector.extract_strided_slice %166 {offsets = [0, 0], sizes = [2, 32], strides = [1, 1]} : vector<2x96xf32> to vector<2x32xf32>
    %169 = arith.addf %167, %168 : vector<2x32xf32>
    %170 = arith.negf %169 : vector<2x32xf32>
    %171 = math.exp %170 : vector<2x32xf32>
    %cst_57 = arith.constant 1.000000e+00 : f32
    %172 = vector.broadcast %cst_57 : f32 to vector<2x32xf32>
    %173 = arith.addf %172, %171 : vector<2x32xf32>
    %174 = arith.divf %172, %173 : vector<2x32xf32>
    %175 = vector.extract_strided_slice %164 {offsets = [0, 32], sizes = [2, 32], strides = [1, 1]} : vector<2x96xf32> to vector<2x32xf32>
    %176 = vector.extract_strided_slice %166 {offsets = [0, 32], sizes = [2, 32], strides = [1, 1]} : vector<2x96xf32> to vector<2x32xf32>
    %177 = arith.addf %175, %176 : vector<2x32xf32>
    %178 = arith.negf %177 : vector<2x32xf32>
    %179 = math.exp %178 : vector<2x32xf32>
    %cst_58 = arith.constant 1.000000e+00 : f32
    %180 = vector.broadcast %cst_58 : f32 to vector<2x32xf32>
    %181 = arith.addf %180, %179 : vector<2x32xf32>
    %182 = arith.divf %180, %181 : vector<2x32xf32>
    %183 = vector.extract_strided_slice %164 {offsets = [0, 64], sizes = [2, 32], strides = [1, 1]} : vector<2x96xf32> to vector<2x32xf32>
    %184 = vector.extract_strided_slice %166 {offsets = [0, 64], sizes = [2, 32], strides = [1, 1]} : vector<2x96xf32> to vector<2x32xf32>
    %185 = vector.broadcast %4 : vector<1x32xf32> to vector<2x32xf32>
    %186 = arith.addf %184, %185 : vector<2x32xf32>
    %187 = arith.mulf %174, %186 : vector<2x32xf32>
    %188 = arith.addf %183, %187 : vector<2x32xf32>
    %189 = math.tanh %188 : vector<2x32xf32>
    %cst_59 = arith.constant 1.000000e+00 : f32
    %190 = vector.broadcast %cst_59 : f32 to vector<2x32xf32>
    %191 = arith.subf %190, %182 : vector<2x32xf32>
    %192 = arith.mulf %191, %189 : vector<2x32xf32>
    %193 = arith.mulf %182, %161 : vector<2x32xf32>
    %194 = arith.addf %192, %193 : vector<2x32xf32>
    %c0_60 = arith.constant 0 : index
    %c0_61 = arith.constant 0 : index
    %195 = vector.load %arg5[%c0_60, %c0_61] : memref<2x32xf32, #tpu.memory_space<vmem>>, vector<2x32xf32>
    tpu.vector_store %arg5[%c0_60, %c0_61], %194 {strides = array<i32>} : memref<2x32xf32, #tpu.memory_space<vmem>>, vector<2x32xf32>,
    %196 = arith.index_cast %c4_i32 : i32 to index
    %c0_62 = arith.constant 0 : index
    %c0_63 = arith.constant 0 : index
    %197 = vector.load %arg4[%196, %c0_62, %c0_63] : memref<8x2x32xf32, #tpu.memory_space<vmem>>, vector<1x2x32xf32>
    %198 = vector.shape_cast %197 : vector<1x2x32xf32> to vector<2x32xf32>
    %199 = vector.shape_cast %194 : vector<2x32xf32> to vector<1x2x32xf32>
    tpu.vector_store %arg4[%196, %c0_62, %c0_63], %199 {strides = array<i32>} : memref<8x2x32xf32, #tpu.memory_space<vmem>>, vector<1x2x32xf32>,
    %c5_i32 = arith.constant 5 : i32
    %c0_64 = arith.constant 0 : index
    %c0_65 = arith.constant 0 : index
    %200 = vector.load %arg5[%c0_64, %c0_65] : memref<2x32xf32, #tpu.memory_space<vmem>>, vector<2x32xf32>
    %201 = arith.index_cast %c5_i32 : i32 to index
    %c0_66 = arith.constant 0 : index
    %c0_67 = arith.constant 0 : index
    %202 = vector.load %arg1[%201, %c0_66, %c0_67] : memref<8x2x96xf32, #tpu.memory_space<vmem>>, vector<1x2x96xf32>
    %203 = vector.shape_cast %202 : vector<1x2x96xf32> to vector<2x96xf32>
    %204 = arith.truncf %200 : vector<2x32xf32> to vector<2x32xbf16>
    %cst_68 = arith.constant dense<0.000000e+00> : vector<2x96xf32>
    %205 = tpu.matmul %204, %3, %cst_68 {dimension_numbers = #tpu.dot_dimension_numbers<[1], [0], [0], [1], [0, 0, 1, 1], [], []>} : vector<2x32xbf16>, vector<32x96xbf16>, vector<2x96xf32> -> vector<2x96xf32>
    %206 = vector.extract_strided_slice %203 {offsets = [0, 0], sizes = [2, 32], strides = [1, 1]} : vector<2x96xf32> to vector<2x32xf32>
    %207 = vector.extract_strided_slice %205 {offsets = [0, 0], sizes = [2, 32], strides = [1, 1]} : vector<2x96xf32> to vector<2x32xf32>
    %208 = arith.addf %206, %207 : vector<2x32xf32>
    %209 = arith.negf %208 : vector<2x32xf32>
    %210 = math.exp %209 : vector<2x32xf32>
    %cst_69 = arith.constant 1.000000e+00 : f32
    %211 = vector.broadcast %cst_69 : f32 to vector<2x32xf32>
    %212 = arith.addf %211, %210 : vector<2x32xf32>
    %213 = arith.divf %211, %212 : vector<2x32xf32>
    %214 = vector.extract_strided_slice %203 {offsets = [0, 32], sizes = [2, 32], strides = [1, 1]} : vector<2x96xf32> to vector<2x32xf32>
    %215 = vector.extract_strided_slice %205 {offsets = [0, 32], sizes = [2, 32], strides = [1, 1]} : vector<2x96xf32> to vector<2x32xf32>
    %216 = arith.addf %214, %215 : vector<2x32xf32>
    %217 = arith.negf %216 : vector<2x32xf32>
    %218 = math.exp %217 : vector<2x32xf32>
    %cst_70 = arith.constant 1.000000e+00 : f32
    %219 = vector.broadcast %cst_70 : f32 to vector<2x32xf32>
    %220 = arith.addf %219, %218 : vector<2x32xf32>
    %221 = arith.divf %219, %220 : vector<2x32xf32>
    %222 = vector.extract_strided_slice %203 {offsets = [0, 64], sizes = [2, 32], strides = [1, 1]} : vector<2x96xf32> to vector<2x32xf32>
    %223 = vector.extract_strided_slice %205 {offsets = [0, 64], sizes = [2, 32], strides = [1, 1]} : vector<2x96xf32> to vector<2x32xf32>
    %224 = vector.broadcast %4 : vector<1x32xf32> to vector<2x32xf32>
    %225 = arith.addf %223, %224 : vector<2x32xf32>
    %226 = arith.mulf %213, %225 : vector<2x32xf32>
    %227 = arith.addf %222, %226 : vector<2x32xf32>
    %228 = math.tanh %227 : vector<2x32xf32>
    %cst_71 = arith.constant 1.000000e+00 : f32
    %229 = vector.broadcast %cst_71 : f32 to vector<2x32xf32>
    %230 = arith.subf %229, %221 : vector<2x32xf32>
    %231 = arith.mulf %230, %228 : vector<2x32xf32>
    %232 = arith.mulf %221, %200 : vector<2x32xf32>
    %233 = arith.addf %231, %232 : vector<2x32xf32>
    %c0_72 = arith.constant 0 : index
    %c0_73 = arith.constant 0 : index
    %234 = vector.load %arg5[%c0_72, %c0_73] : memref<2x32xf32, #tpu.memory_space<vmem>>, vector<2x32xf32>
    tpu.vector_store %arg5[%c0_72, %c0_73], %233 {strides = array<i32>} : memref<2x32xf32, #tpu.memory_space<vmem>>, vector<2x32xf32>,
    %235 = arith.index_cast %c5_i32 : i32 to index
    %c0_74 = arith.constant 0 : index
    %c0_75 = arith.constant 0 : index
    %236 = vector.load %arg4[%235, %c0_74, %c0_75] : memref<8x2x32xf32, #tpu.memory_space<vmem>>, vector<1x2x32xf32>
    %237 = vector.shape_cast %236 : vector<1x2x32xf32> to vector<2x32xf32>
    %238 = vector.shape_cast %233 : vector<2x32xf32> to vector<1x2x32xf32>
    tpu.vector_store %arg4[%235, %c0_74, %c0_75], %238 {strides = array<i32>} : memref<8x2x32xf32, #tpu.memory_space<vmem>>, vector<1x2x32xf32>,
    %c6_i32 = arith.constant 6 : i32
    %c0_76 = arith.constant 0 : index
    %c0_77 = arith.constant 0 : index
    %239 = vector.load %arg5[%c0_76, %c0_77] : memref<2x32xf32, #tpu.memory_space<vmem>>, vector<2x32xf32>
    %240 = arith.index_cast %c6_i32 : i32 to index
    %c0_78 = arith.constant 0 : index
    %c0_79 = arith.constant 0 : index
    %241 = vector.load %arg1[%240, %c0_78, %c0_79] : memref<8x2x96xf32, #tpu.memory_space<vmem>>, vector<1x2x96xf32>
    %242 = vector.shape_cast %241 : vector<1x2x96xf32> to vector<2x96xf32>
    %243 = arith.truncf %239 : vector<2x32xf32> to vector<2x32xbf16>
    %cst_80 = arith.constant dense<0.000000e+00> : vector<2x96xf32>
    %244 = tpu.matmul %243, %3, %cst_80 {dimension_numbers = #tpu.dot_dimension_numbers<[1], [0], [0], [1], [0, 0, 1, 1], [], []>} : vector<2x32xbf16>, vector<32x96xbf16>, vector<2x96xf32> -> vector<2x96xf32>
    %245 = vector.extract_strided_slice %242 {offsets = [0, 0], sizes = [2, 32], strides = [1, 1]} : vector<2x96xf32> to vector<2x32xf32>
    %246 = vector.extract_strided_slice %244 {offsets = [0, 0], sizes = [2, 32], strides = [1, 1]} : vector<2x96xf32> to vector<2x32xf32>
    %247 = arith.addf %245, %246 : vector<2x32xf32>
    %248 = arith.negf %247 : vector<2x32xf32>
    %249 = math.exp %248 : vector<2x32xf32>
    %cst_81 = arith.constant 1.000000e+00 : f32
    %250 = vector.broadcast %cst_81 : f32 to vector<2x32xf32>
    %251 = arith.addf %250, %249 : vector<2x32xf32>
    %252 = arith.divf %250, %251 : vector<2x32xf32>
    %253 = vector.extract_strided_slice %242 {offsets = [0, 32], sizes = [2, 32], strides = [1, 1]} : vector<2x96xf32> to vector<2x32xf32>
    %254 = vector.extract_strided_slice %244 {offsets = [0, 32], sizes = [2, 32], strides = [1, 1]} : vector<2x96xf32> to vector<2x32xf32>
    %255 = arith.addf %253, %254 : vector<2x32xf32>
    %256 = arith.negf %255 : vector<2x32xf32>
    %257 = math.exp %256 : vector<2x32xf32>
    %cst_82 = arith.constant 1.000000e+00 : f32
    %258 = vector.broadcast %cst_82 : f32 to vector<2x32xf32>
    %259 = arith.addf %258, %257 : vector<2x32xf32>
    %260 = arith.divf %258, %259 : vector<2x32xf32>
    %261 = vector.extract_strided_slice %242 {offsets = [0, 64], sizes = [2, 32], strides = [1, 1]} : vector<2x96xf32> to vector<2x32xf32>
    %262 = vector.extract_strided_slice %244 {offsets = [0, 64], sizes = [2, 32], strides = [1, 1]} : vector<2x96xf32> to vector<2x32xf32>
    %263 = vector.broadcast %4 : vector<1x32xf32> to vector<2x32xf32>
    %264 = arith.addf %262, %263 : vector<2x32xf32>
    %265 = arith.mulf %252, %264 : vector<2x32xf32>
    %266 = arith.addf %261, %265 : vector<2x32xf32>
    %267 = math.tanh %266 : vector<2x32xf32>
    %cst_83 = arith.constant 1.000000e+00 : f32
    %268 = vector.broadcast %cst_83 : f32 to vector<2x32xf32>
    %269 = arith.subf %268, %260 : vector<2x32xf32>
    %270 = arith.mulf %269, %267 : vector<2x32xf32>
    %271 = arith.mulf %260, %239 : vector<2x32xf32>
    %272 = arith.addf %270, %271 : vector<2x32xf32>
    %c0_84 = arith.constant 0 : index
    %c0_85 = arith.constant 0 : index
    %273 = vector.load %arg5[%c0_84, %c0_85] : memref<2x32xf32, #tpu.memory_space<vmem>>, vector<2x32xf32>
    tpu.vector_store %arg5[%c0_84, %c0_85], %272 {strides = array<i32>} : memref<2x32xf32, #tpu.memory_space<vmem>>, vector<2x32xf32>,
    %274 = arith.index_cast %c6_i32 : i32 to index
    %c0_86 = arith.constant 0 : index
    %c0_87 = arith.constant 0 : index
    %275 = vector.load %arg4[%274, %c0_86, %c0_87] : memref<8x2x32xf32, #tpu.memory_space<vmem>>, vector<1x2x32xf32>
    %276 = vector.shape_cast %275 : vector<1x2x32xf32> to vector<2x32xf32>
    %277 = vector.shape_cast %272 : vector<2x32xf32> to vector<1x2x32xf32>
    tpu.vector_store %arg4[%274, %c0_86, %c0_87], %277 {strides = array<i32>} : memref<8x2x32xf32, #tpu.memory_space<vmem>>, vector<1x2x32xf32>,
    %c7_i32 = arith.constant 7 : i32
    %c0_88 = arith.constant 0 : index
    %c0_89 = arith.constant 0 : index
    %278 = vector.load %arg5[%c0_88, %c0_89] : memref<2x32xf32, #tpu.memory_space<vmem>>, vector<2x32xf32>
    %279 = arith.index_cast %c7_i32 : i32 to index
    %c0_90 = arith.constant 0 : index
    %c0_91 = arith.constant 0 : index
    %280 = vector.load %arg1[%279, %c0_90, %c0_91] : memref<8x2x96xf32, #tpu.memory_space<vmem>>, vector<1x2x96xf32>
    %281 = vector.shape_cast %280 : vector<1x2x96xf32> to vector<2x96xf32>
    %282 = arith.truncf %278 : vector<2x32xf32> to vector<2x32xbf16>
    %cst_92 = arith.constant dense<0.000000e+00> : vector<2x96xf32>
    %283 = tpu.matmul %282, %3, %cst_92 {dimension_numbers = #tpu.dot_dimension_numbers<[1], [0], [0], [1], [0, 0, 1, 1], [], []>} : vector<2x32xbf16>, vector<32x96xbf16>, vector<2x96xf32> -> vector<2x96xf32>
    %284 = vector.extract_strided_slice %281 {offsets = [0, 0], sizes = [2, 32], strides = [1, 1]} : vector<2x96xf32> to vector<2x32xf32>
    %285 = vector.extract_strided_slice %283 {offsets = [0, 0], sizes = [2, 32], strides = [1, 1]} : vector<2x96xf32> to vector<2x32xf32>
    %286 = arith.addf %284, %285 : vector<2x32xf32>
    %287 = arith.negf %286 : vector<2x32xf32>
    %288 = math.exp %287 : vector<2x32xf32>
    %cst_93 = arith.constant 1.000000e+00 : f32
    %289 = vector.broadcast %cst_93 : f32 to vector<2x32xf32>
    %290 = arith.addf %289, %288 : vector<2x32xf32>
    %291 = arith.divf %289, %290 : vector<2x32xf32>
    %292 = vector.extract_strided_slice %281 {offsets = [0, 32], sizes = [2, 32], strides = [1, 1]} : vector<2x96xf32> to vector<2x32xf32>
    %293 = vector.extract_strided_slice %283 {offsets = [0, 32], sizes = [2, 32], strides = [1, 1]} : vector<2x96xf32> to vector<2x32xf32>
    %294 = arith.addf %292, %293 : vector<2x32xf32>
    %295 = arith.negf %294 : vector<2x32xf32>
    %296 = math.exp %295 : vector<2x32xf32>
    %cst_94 = arith.constant 1.000000e+00 : f32
    %297 = vector.broadcast %cst_94 : f32 to vector<2x32xf32>
    %298 = arith.addf %297, %296 : vector<2x32xf32>
    %299 = arith.divf %297, %298 : vector<2x32xf32>
    %300 = vector.extract_strided_slice %281 {offsets = [0, 64], sizes = [2, 32], strides = [1, 1]} : vector<2x96xf32> to vector<2x32xf32>
    %301 = vector.extract_strided_slice %283 {offsets = [0, 64], sizes = [2, 32], strides = [1, 1]} : vector<2x96xf32> to vector<2x32xf32>
    %302 = vector.broadcast %4 : vector<1x32xf32> to vector<2x32xf32>
    %303 = arith.addf %301, %302 : vector<2x32xf32>
    %304 = arith.mulf %291, %303 : vector<2x32xf32>
    %305 = arith.addf %300, %304 : vector<2x32xf32>
    %306 = math.tanh %305 : vector<2x32xf32>
    %cst_95 = arith.constant 1.000000e+00 : f32
    %307 = vector.broadcast %cst_95 : f32 to vector<2x32xf32>
    %308 = arith.subf %307, %299 : vector<2x32xf32>
    %309 = arith.mulf %308, %306 : vector<2x32xf32>
    %310 = arith.mulf %299, %278 : vector<2x32xf32>
    %311 = arith.addf %309, %310 : vector<2x32xf32>
    %c0_96 = arith.constant 0 : index
    %c0_97 = arith.constant 0 : index
    %312 = vector.load %arg5[%c0_96, %c0_97] : memref<2x32xf32, #tpu.memory_space<vmem>>, vector<2x32xf32>
    tpu.vector_store %arg5[%c0_96, %c0_97], %311 {strides = array<i32>} : memref<2x32xf32, #tpu.memory_space<vmem>>, vector<2x32xf32>,
    %313 = arith.index_cast %c7_i32 : i32 to index
    %c0_98 = arith.constant 0 : index
    %c0_99 = arith.constant 0 : index
    %314 = vector.load %arg4[%313, %c0_98, %c0_99] : memref<8x2x32xf32, #tpu.memory_space<vmem>>, vector<1x2x32xf32>
    %315 = vector.shape_cast %314 : vector<1x2x32xf32> to vector<2x32xf32>
    %316 = vector.shape_cast %311 : vector<2x32xf32> to vector<1x2x32xf32>
    tpu.vector_store %arg4[%313, %c0_98, %c0_99], %316 {strides = array<i32>} : memref<8x2x32xf32, #tpu.memory_space<vmem>>, vector<1x2x32xf32>,
    %c8_i32 = arith.constant 8 : i32
    return
  }
  func.func @transform_0(%arg0: i32) -> (i32, i32, i32) {
    %c0_i32 = arith.constant 0 : i32
    %c0_i32_0 = arith.constant 0 : i32
    %c0_i32_1 = arith.constant 0 : i32
    return %arg0, %c0_i32, %c0_i32_0 : i32, i32, i32
  }
  func.func @transform_1(%arg0: i32) -> (i32, i32) {
    %c0_i32 = arith.constant 0 : i32
    %c0_i32_0 = arith.constant 0 : i32
    %c0_i32_1 = arith.constant 0 : i32
    return %c0_i32, %c0_i32_0 : i32, i32
  }
  func.func @transform_2(%arg0: i32) -> (i32, i32) {
    %c0_i32 = arith.constant 0 : i32
    %c0_i32_0 = arith.constant 0 : i32
    %c0_i32_1 = arith.constant 0 : i32
    return %c0_i32, %c0_i32_0 : i32, i32
  }
  func.func @transform_3(%arg0: i32) -> (i32, i32, i32) {
    %c0_i32 = arith.constant 0 : i32
    %c0_i32_0 = arith.constant 0 : i32
    %c0_i32_1 = arith.constant 0 : i32
    return %arg0, %c0_i32, %c0_i32_0 : i32, i32, i32
  }
}

module attributes {stable_mosaic.version = 11 : i64} {
  func.func @_gru_recurrence_kernel(%arg0: i32, %arg1: memref<8x2x96xf32, #tpu.memory_space<vmem>>, %arg2: memref<32x96xbf16, #tpu.memory_space<vmem>>, %arg3: memref<1x32xf32, #tpu.memory_space<vmem>>, %arg4: memref<2x32xf32, #tpu.memory_space<vmem>>, %arg5: memref<2x32xf32, #tpu.memory_space<vmem>>) attributes {dimension_semantics = [#tpu.dimension_semantics<arbitrary>], iteration_bounds = array<i64: 1>, scalar_prefetch = 0 : i64, scratch_operands = 1 : i64, tpu.core_type = #tpu.core_type<tc>, window_params = [{transform_indices = @transform_0, window_bounds = array<i64: 8, 2, 96>}, {pipeline_mode = #tpu.pipeline_mode<synchronous>, transform_indices = @transform_1, window_bounds = array<i64: 32, 96>}, {pipeline_mode = #tpu.pipeline_mode<synchronous>, transform_indices = @transform_2, window_bounds = array<i64: 1, 32>}, {pipeline_mode = #tpu.pipeline_mode<synchronous>, transform_indices = @transform_3, window_bounds = array<i64: 2, 32>}]} {
    %c0_i32 = arith.constant 0 : i32
    %0 = arith.cmpi eq, %arg0, %c0_i32 : i32
    %1 = arith.extui %0 : i1 to i32
    %c0_i32_0 = arith.constant 0 : i32
    %2 = arith.cmpi ne, %1, %c0_i32_0 : i32
    scf.if %2 {
      %cst_88 = arith.constant 0.000000e+00 : f32
      %287 = vector.broadcast %cst_88 : f32 to vector<2x32xf32>
      %c0_89 = arith.constant 0 : index
      %c0_90 = arith.constant 0 : index
      %288 = vector.load %arg5[%c0_89, %c0_90] : memref<2x32xf32, #tpu.memory_space<vmem>>, vector<2x32xf32>
      tpu.vector_store %arg5[%c0_89, %c0_90], %287 {strides = array<i32>} : memref<2x32xf32, #tpu.memory_space<vmem>>, vector<2x32xf32>,
    } else {
    }
    %c0 = arith.constant 0 : index
    %c0_1 = arith.constant 0 : index
    %3 = vector.load %arg2[%c0, %c0_1] : memref<32x96xbf16, #tpu.memory_space<vmem>>, vector<32x96xbf16>
    %c0_2 = arith.constant 0 : index
    %c0_3 = arith.constant 0 : index
    %4 = vector.load %arg3[%c0_2, %c0_3] : memref<1x32xf32, #tpu.memory_space<vmem>>, vector<1x32xf32>
    %c0_i32_4 = arith.constant 0 : i32
    %c0_5 = arith.constant 0 : index
    %c0_6 = arith.constant 0 : index
    %5 = vector.load %arg5[%c0_5, %c0_6] : memref<2x32xf32, #tpu.memory_space<vmem>>, vector<2x32xf32>
    %6 = arith.index_cast %c0_i32_4 : i32 to index
    %c0_7 = arith.constant 0 : index
    %c0_8 = arith.constant 0 : index
    %7 = vector.load %arg1[%6, %c0_7, %c0_8] : memref<8x2x96xf32, #tpu.memory_space<vmem>>, vector<1x2x96xf32>
    %8 = vector.shape_cast %7 : vector<1x2x96xf32> to vector<2x96xf32>
    %9 = arith.truncf %5 : vector<2x32xf32> to vector<2x32xbf16>
    %cst = arith.constant dense<0.000000e+00> : vector<2x96xf32>
    %10 = tpu.matmul %9, %3, %cst {dimension_numbers = #tpu.dot_dimension_numbers<[1], [0], [0], [1], [0, 0, 1, 1], [], []>} : vector<2x32xbf16>, vector<32x96xbf16>, vector<2x96xf32> -> vector<2x96xf32>
    %11 = vector.extract_strided_slice %8 {offsets = [0, 0], sizes = [2, 32], strides = [1, 1]} : vector<2x96xf32> to vector<2x32xf32>
    %12 = vector.extract_strided_slice %10 {offsets = [0, 0], sizes = [2, 32], strides = [1, 1]} : vector<2x96xf32> to vector<2x32xf32>
    %13 = arith.addf %11, %12 : vector<2x32xf32>
    %14 = arith.negf %13 : vector<2x32xf32>
    %15 = math.exp %14 : vector<2x32xf32>
    %cst_9 = arith.constant 1.000000e+00 : f32
    %16 = vector.broadcast %cst_9 : f32 to vector<2x32xf32>
    %17 = arith.addf %16, %15 : vector<2x32xf32>
    %18 = arith.divf %16, %17 : vector<2x32xf32>
    %19 = vector.extract_strided_slice %8 {offsets = [0, 32], sizes = [2, 32], strides = [1, 1]} : vector<2x96xf32> to vector<2x32xf32>
    %20 = vector.extract_strided_slice %10 {offsets = [0, 32], sizes = [2, 32], strides = [1, 1]} : vector<2x96xf32> to vector<2x32xf32>
    %21 = arith.addf %19, %20 : vector<2x32xf32>
    %22 = arith.negf %21 : vector<2x32xf32>
    %23 = math.exp %22 : vector<2x32xf32>
    %cst_10 = arith.constant 1.000000e+00 : f32
    %24 = vector.broadcast %cst_10 : f32 to vector<2x32xf32>
    %25 = arith.addf %24, %23 : vector<2x32xf32>
    %26 = arith.divf %24, %25 : vector<2x32xf32>
    %27 = vector.extract_strided_slice %8 {offsets = [0, 64], sizes = [2, 32], strides = [1, 1]} : vector<2x96xf32> to vector<2x32xf32>
    %28 = vector.extract_strided_slice %10 {offsets = [0, 64], sizes = [2, 32], strides = [1, 1]} : vector<2x96xf32> to vector<2x32xf32>
    %29 = vector.broadcast %4 : vector<1x32xf32> to vector<2x32xf32>
    %30 = arith.addf %28, %29 : vector<2x32xf32>
    %31 = arith.mulf %18, %30 : vector<2x32xf32>
    %32 = arith.addf %27, %31 : vector<2x32xf32>
    %33 = math.tanh %32 : vector<2x32xf32>
    %cst_11 = arith.constant 1.000000e+00 : f32
    %34 = vector.broadcast %cst_11 : f32 to vector<2x32xf32>
    %35 = arith.subf %34, %26 : vector<2x32xf32>
    %36 = arith.mulf %35, %33 : vector<2x32xf32>
    %37 = arith.mulf %26, %5 : vector<2x32xf32>
    %38 = arith.addf %36, %37 : vector<2x32xf32>
    %c0_12 = arith.constant 0 : index
    %c0_13 = arith.constant 0 : index
    %39 = vector.load %arg5[%c0_12, %c0_13] : memref<2x32xf32, #tpu.memory_space<vmem>>, vector<2x32xf32>
    tpu.vector_store %arg5[%c0_12, %c0_13], %38 {strides = array<i32>} : memref<2x32xf32, #tpu.memory_space<vmem>>, vector<2x32xf32>,
    %c1_i32 = arith.constant 1 : i32
    %c0_14 = arith.constant 0 : index
    %c0_15 = arith.constant 0 : index
    %40 = vector.load %arg5[%c0_14, %c0_15] : memref<2x32xf32, #tpu.memory_space<vmem>>, vector<2x32xf32>
    %41 = arith.index_cast %c1_i32 : i32 to index
    %c0_16 = arith.constant 0 : index
    %c0_17 = arith.constant 0 : index
    %42 = vector.load %arg1[%41, %c0_16, %c0_17] : memref<8x2x96xf32, #tpu.memory_space<vmem>>, vector<1x2x96xf32>
    %43 = vector.shape_cast %42 : vector<1x2x96xf32> to vector<2x96xf32>
    %44 = arith.truncf %40 : vector<2x32xf32> to vector<2x32xbf16>
    %cst_18 = arith.constant dense<0.000000e+00> : vector<2x96xf32>
    %45 = tpu.matmul %44, %3, %cst_18 {dimension_numbers = #tpu.dot_dimension_numbers<[1], [0], [0], [1], [0, 0, 1, 1], [], []>} : vector<2x32xbf16>, vector<32x96xbf16>, vector<2x96xf32> -> vector<2x96xf32>
    %46 = vector.extract_strided_slice %43 {offsets = [0, 0], sizes = [2, 32], strides = [1, 1]} : vector<2x96xf32> to vector<2x32xf32>
    %47 = vector.extract_strided_slice %45 {offsets = [0, 0], sizes = [2, 32], strides = [1, 1]} : vector<2x96xf32> to vector<2x32xf32>
    %48 = arith.addf %46, %47 : vector<2x32xf32>
    %49 = arith.negf %48 : vector<2x32xf32>
    %50 = math.exp %49 : vector<2x32xf32>
    %cst_19 = arith.constant 1.000000e+00 : f32
    %51 = vector.broadcast %cst_19 : f32 to vector<2x32xf32>
    %52 = arith.addf %51, %50 : vector<2x32xf32>
    %53 = arith.divf %51, %52 : vector<2x32xf32>
    %54 = vector.extract_strided_slice %43 {offsets = [0, 32], sizes = [2, 32], strides = [1, 1]} : vector<2x96xf32> to vector<2x32xf32>
    %55 = vector.extract_strided_slice %45 {offsets = [0, 32], sizes = [2, 32], strides = [1, 1]} : vector<2x96xf32> to vector<2x32xf32>
    %56 = arith.addf %54, %55 : vector<2x32xf32>
    %57 = arith.negf %56 : vector<2x32xf32>
    %58 = math.exp %57 : vector<2x32xf32>
    %cst_20 = arith.constant 1.000000e+00 : f32
    %59 = vector.broadcast %cst_20 : f32 to vector<2x32xf32>
    %60 = arith.addf %59, %58 : vector<2x32xf32>
    %61 = arith.divf %59, %60 : vector<2x32xf32>
    %62 = vector.extract_strided_slice %43 {offsets = [0, 64], sizes = [2, 32], strides = [1, 1]} : vector<2x96xf32> to vector<2x32xf32>
    %63 = vector.extract_strided_slice %45 {offsets = [0, 64], sizes = [2, 32], strides = [1, 1]} : vector<2x96xf32> to vector<2x32xf32>
    %64 = vector.broadcast %4 : vector<1x32xf32> to vector<2x32xf32>
    %65 = arith.addf %63, %64 : vector<2x32xf32>
    %66 = arith.mulf %53, %65 : vector<2x32xf32>
    %67 = arith.addf %62, %66 : vector<2x32xf32>
    %68 = math.tanh %67 : vector<2x32xf32>
    %cst_21 = arith.constant 1.000000e+00 : f32
    %69 = vector.broadcast %cst_21 : f32 to vector<2x32xf32>
    %70 = arith.subf %69, %61 : vector<2x32xf32>
    %71 = arith.mulf %70, %68 : vector<2x32xf32>
    %72 = arith.mulf %61, %40 : vector<2x32xf32>
    %73 = arith.addf %71, %72 : vector<2x32xf32>
    %c0_22 = arith.constant 0 : index
    %c0_23 = arith.constant 0 : index
    %74 = vector.load %arg5[%c0_22, %c0_23] : memref<2x32xf32, #tpu.memory_space<vmem>>, vector<2x32xf32>
    tpu.vector_store %arg5[%c0_22, %c0_23], %73 {strides = array<i32>} : memref<2x32xf32, #tpu.memory_space<vmem>>, vector<2x32xf32>,
    %c2_i32 = arith.constant 2 : i32
    %c0_24 = arith.constant 0 : index
    %c0_25 = arith.constant 0 : index
    %75 = vector.load %arg5[%c0_24, %c0_25] : memref<2x32xf32, #tpu.memory_space<vmem>>, vector<2x32xf32>
    %76 = arith.index_cast %c2_i32 : i32 to index
    %c0_26 = arith.constant 0 : index
    %c0_27 = arith.constant 0 : index
    %77 = vector.load %arg1[%76, %c0_26, %c0_27] : memref<8x2x96xf32, #tpu.memory_space<vmem>>, vector<1x2x96xf32>
    %78 = vector.shape_cast %77 : vector<1x2x96xf32> to vector<2x96xf32>
    %79 = arith.truncf %75 : vector<2x32xf32> to vector<2x32xbf16>
    %cst_28 = arith.constant dense<0.000000e+00> : vector<2x96xf32>
    %80 = tpu.matmul %79, %3, %cst_28 {dimension_numbers = #tpu.dot_dimension_numbers<[1], [0], [0], [1], [0, 0, 1, 1], [], []>} : vector<2x32xbf16>, vector<32x96xbf16>, vector<2x96xf32> -> vector<2x96xf32>
    %81 = vector.extract_strided_slice %78 {offsets = [0, 0], sizes = [2, 32], strides = [1, 1]} : vector<2x96xf32> to vector<2x32xf32>
    %82 = vector.extract_strided_slice %80 {offsets = [0, 0], sizes = [2, 32], strides = [1, 1]} : vector<2x96xf32> to vector<2x32xf32>
    %83 = arith.addf %81, %82 : vector<2x32xf32>
    %84 = arith.negf %83 : vector<2x32xf32>
    %85 = math.exp %84 : vector<2x32xf32>
    %cst_29 = arith.constant 1.000000e+00 : f32
    %86 = vector.broadcast %cst_29 : f32 to vector<2x32xf32>
    %87 = arith.addf %86, %85 : vector<2x32xf32>
    %88 = arith.divf %86, %87 : vector<2x32xf32>
    %89 = vector.extract_strided_slice %78 {offsets = [0, 32], sizes = [2, 32], strides = [1, 1]} : vector<2x96xf32> to vector<2x32xf32>
    %90 = vector.extract_strided_slice %80 {offsets = [0, 32], sizes = [2, 32], strides = [1, 1]} : vector<2x96xf32> to vector<2x32xf32>
    %91 = arith.addf %89, %90 : vector<2x32xf32>
    %92 = arith.negf %91 : vector<2x32xf32>
    %93 = math.exp %92 : vector<2x32xf32>
    %cst_30 = arith.constant 1.000000e+00 : f32
    %94 = vector.broadcast %cst_30 : f32 to vector<2x32xf32>
    %95 = arith.addf %94, %93 : vector<2x32xf32>
    %96 = arith.divf %94, %95 : vector<2x32xf32>
    %97 = vector.extract_strided_slice %78 {offsets = [0, 64], sizes = [2, 32], strides = [1, 1]} : vector<2x96xf32> to vector<2x32xf32>
    %98 = vector.extract_strided_slice %80 {offsets = [0, 64], sizes = [2, 32], strides = [1, 1]} : vector<2x96xf32> to vector<2x32xf32>
    %99 = vector.broadcast %4 : vector<1x32xf32> to vector<2x32xf32>
    %100 = arith.addf %98, %99 : vector<2x32xf32>
    %101 = arith.mulf %88, %100 : vector<2x32xf32>
    %102 = arith.addf %97, %101 : vector<2x32xf32>
    %103 = math.tanh %102 : vector<2x32xf32>
    %cst_31 = arith.constant 1.000000e+00 : f32
    %104 = vector.broadcast %cst_31 : f32 to vector<2x32xf32>
    %105 = arith.subf %104, %96 : vector<2x32xf32>
    %106 = arith.mulf %105, %103 : vector<2x32xf32>
    %107 = arith.mulf %96, %75 : vector<2x32xf32>
    %108 = arith.addf %106, %107 : vector<2x32xf32>
    %c0_32 = arith.constant 0 : index
    %c0_33 = arith.constant 0 : index
    %109 = vector.load %arg5[%c0_32, %c0_33] : memref<2x32xf32, #tpu.memory_space<vmem>>, vector<2x32xf32>
    tpu.vector_store %arg5[%c0_32, %c0_33], %108 {strides = array<i32>} : memref<2x32xf32, #tpu.memory_space<vmem>>, vector<2x32xf32>,
    %c3_i32 = arith.constant 3 : i32
    %c0_34 = arith.constant 0 : index
    %c0_35 = arith.constant 0 : index
    %110 = vector.load %arg5[%c0_34, %c0_35] : memref<2x32xf32, #tpu.memory_space<vmem>>, vector<2x32xf32>
    %111 = arith.index_cast %c3_i32 : i32 to index
    %c0_36 = arith.constant 0 : index
    %c0_37 = arith.constant 0 : index
    %112 = vector.load %arg1[%111, %c0_36, %c0_37] : memref<8x2x96xf32, #tpu.memory_space<vmem>>, vector<1x2x96xf32>
    %113 = vector.shape_cast %112 : vector<1x2x96xf32> to vector<2x96xf32>
    %114 = arith.truncf %110 : vector<2x32xf32> to vector<2x32xbf16>
    %cst_38 = arith.constant dense<0.000000e+00> : vector<2x96xf32>
    %115 = tpu.matmul %114, %3, %cst_38 {dimension_numbers = #tpu.dot_dimension_numbers<[1], [0], [0], [1], [0, 0, 1, 1], [], []>} : vector<2x32xbf16>, vector<32x96xbf16>, vector<2x96xf32> -> vector<2x96xf32>
    %116 = vector.extract_strided_slice %113 {offsets = [0, 0], sizes = [2, 32], strides = [1, 1]} : vector<2x96xf32> to vector<2x32xf32>
    %117 = vector.extract_strided_slice %115 {offsets = [0, 0], sizes = [2, 32], strides = [1, 1]} : vector<2x96xf32> to vector<2x32xf32>
    %118 = arith.addf %116, %117 : vector<2x32xf32>
    %119 = arith.negf %118 : vector<2x32xf32>
    %120 = math.exp %119 : vector<2x32xf32>
    %cst_39 = arith.constant 1.000000e+00 : f32
    %121 = vector.broadcast %cst_39 : f32 to vector<2x32xf32>
    %122 = arith.addf %121, %120 : vector<2x32xf32>
    %123 = arith.divf %121, %122 : vector<2x32xf32>
    %124 = vector.extract_strided_slice %113 {offsets = [0, 32], sizes = [2, 32], strides = [1, 1]} : vector<2x96xf32> to vector<2x32xf32>
    %125 = vector.extract_strided_slice %115 {offsets = [0, 32], sizes = [2, 32], strides = [1, 1]} : vector<2x96xf32> to vector<2x32xf32>
    %126 = arith.addf %124, %125 : vector<2x32xf32>
    %127 = arith.negf %126 : vector<2x32xf32>
    %128 = math.exp %127 : vector<2x32xf32>
    %cst_40 = arith.constant 1.000000e+00 : f32
    %129 = vector.broadcast %cst_40 : f32 to vector<2x32xf32>
    %130 = arith.addf %129, %128 : vector<2x32xf32>
    %131 = arith.divf %129, %130 : vector<2x32xf32>
    %132 = vector.extract_strided_slice %113 {offsets = [0, 64], sizes = [2, 32], strides = [1, 1]} : vector<2x96xf32> to vector<2x32xf32>
    %133 = vector.extract_strided_slice %115 {offsets = [0, 64], sizes = [2, 32], strides = [1, 1]} : vector<2x96xf32> to vector<2x32xf32>
    %134 = vector.broadcast %4 : vector<1x32xf32> to vector<2x32xf32>
    %135 = arith.addf %133, %134 : vector<2x32xf32>
    %136 = arith.mulf %123, %135 : vector<2x32xf32>
    %137 = arith.addf %132, %136 : vector<2x32xf32>
    %138 = math.tanh %137 : vector<2x32xf32>
    %cst_41 = arith.constant 1.000000e+00 : f32
    %139 = vector.broadcast %cst_41 : f32 to vector<2x32xf32>
    %140 = arith.subf %139, %131 : vector<2x32xf32>
    %141 = arith.mulf %140, %138 : vector<2x32xf32>
    %142 = arith.mulf %131, %110 : vector<2x32xf32>
    %143 = arith.addf %141, %142 : vector<2x32xf32>
    %c0_42 = arith.constant 0 : index
    %c0_43 = arith.constant 0 : index
    %144 = vector.load %arg5[%c0_42, %c0_43] : memref<2x32xf32, #tpu.memory_space<vmem>>, vector<2x32xf32>
    tpu.vector_store %arg5[%c0_42, %c0_43], %143 {strides = array<i32>} : memref<2x32xf32, #tpu.memory_space<vmem>>, vector<2x32xf32>,
    %c4_i32 = arith.constant 4 : i32
    %c0_44 = arith.constant 0 : index
    %c0_45 = arith.constant 0 : index
    %145 = vector.load %arg5[%c0_44, %c0_45] : memref<2x32xf32, #tpu.memory_space<vmem>>, vector<2x32xf32>
    %146 = arith.index_cast %c4_i32 : i32 to index
    %c0_46 = arith.constant 0 : index
    %c0_47 = arith.constant 0 : index
    %147 = vector.load %arg1[%146, %c0_46, %c0_47] : memref<8x2x96xf32, #tpu.memory_space<vmem>>, vector<1x2x96xf32>
    %148 = vector.shape_cast %147 : vector<1x2x96xf32> to vector<2x96xf32>
    %149 = arith.truncf %145 : vector<2x32xf32> to vector<2x32xbf16>
    %cst_48 = arith.constant dense<0.000000e+00> : vector<2x96xf32>
    %150 = tpu.matmul %149, %3, %cst_48 {dimension_numbers = #tpu.dot_dimension_numbers<[1], [0], [0], [1], [0, 0, 1, 1], [], []>} : vector<2x32xbf16>, vector<32x96xbf16>, vector<2x96xf32> -> vector<2x96xf32>
    %151 = vector.extract_strided_slice %148 {offsets = [0, 0], sizes = [2, 32], strides = [1, 1]} : vector<2x96xf32> to vector<2x32xf32>
    %152 = vector.extract_strided_slice %150 {offsets = [0, 0], sizes = [2, 32], strides = [1, 1]} : vector<2x96xf32> to vector<2x32xf32>
    %153 = arith.addf %151, %152 : vector<2x32xf32>
    %154 = arith.negf %153 : vector<2x32xf32>
    %155 = math.exp %154 : vector<2x32xf32>
    %cst_49 = arith.constant 1.000000e+00 : f32
    %156 = vector.broadcast %cst_49 : f32 to vector<2x32xf32>
    %157 = arith.addf %156, %155 : vector<2x32xf32>
    %158 = arith.divf %156, %157 : vector<2x32xf32>
    %159 = vector.extract_strided_slice %148 {offsets = [0, 32], sizes = [2, 32], strides = [1, 1]} : vector<2x96xf32> to vector<2x32xf32>
    %160 = vector.extract_strided_slice %150 {offsets = [0, 32], sizes = [2, 32], strides = [1, 1]} : vector<2x96xf32> to vector<2x32xf32>
    %161 = arith.addf %159, %160 : vector<2x32xf32>
    %162 = arith.negf %161 : vector<2x32xf32>
    %163 = math.exp %162 : vector<2x32xf32>
    %cst_50 = arith.constant 1.000000e+00 : f32
    %164 = vector.broadcast %cst_50 : f32 to vector<2x32xf32>
    %165 = arith.addf %164, %163 : vector<2x32xf32>
    %166 = arith.divf %164, %165 : vector<2x32xf32>
    %167 = vector.extract_strided_slice %148 {offsets = [0, 64], sizes = [2, 32], strides = [1, 1]} : vector<2x96xf32> to vector<2x32xf32>
    %168 = vector.extract_strided_slice %150 {offsets = [0, 64], sizes = [2, 32], strides = [1, 1]} : vector<2x96xf32> to vector<2x32xf32>
    %169 = vector.broadcast %4 : vector<1x32xf32> to vector<2x32xf32>
    %170 = arith.addf %168, %169 : vector<2x32xf32>
    %171 = arith.mulf %158, %170 : vector<2x32xf32>
    %172 = arith.addf %167, %171 : vector<2x32xf32>
    %173 = math.tanh %172 : vector<2x32xf32>
    %cst_51 = arith.constant 1.000000e+00 : f32
    %174 = vector.broadcast %cst_51 : f32 to vector<2x32xf32>
    %175 = arith.subf %174, %166 : vector<2x32xf32>
    %176 = arith.mulf %175, %173 : vector<2x32xf32>
    %177 = arith.mulf %166, %145 : vector<2x32xf32>
    %178 = arith.addf %176, %177 : vector<2x32xf32>
    %c0_52 = arith.constant 0 : index
    %c0_53 = arith.constant 0 : index
    %179 = vector.load %arg5[%c0_52, %c0_53] : memref<2x32xf32, #tpu.memory_space<vmem>>, vector<2x32xf32>
    tpu.vector_store %arg5[%c0_52, %c0_53], %178 {strides = array<i32>} : memref<2x32xf32, #tpu.memory_space<vmem>>, vector<2x32xf32>,
    %c5_i32 = arith.constant 5 : i32
    %c0_54 = arith.constant 0 : index
    %c0_55 = arith.constant 0 : index
    %180 = vector.load %arg5[%c0_54, %c0_55] : memref<2x32xf32, #tpu.memory_space<vmem>>, vector<2x32xf32>
    %181 = arith.index_cast %c5_i32 : i32 to index
    %c0_56 = arith.constant 0 : index
    %c0_57 = arith.constant 0 : index
    %182 = vector.load %arg1[%181, %c0_56, %c0_57] : memref<8x2x96xf32, #tpu.memory_space<vmem>>, vector<1x2x96xf32>
    %183 = vector.shape_cast %182 : vector<1x2x96xf32> to vector<2x96xf32>
    %184 = arith.truncf %180 : vector<2x32xf32> to vector<2x32xbf16>
    %cst_58 = arith.constant dense<0.000000e+00> : vector<2x96xf32>
    %185 = tpu.matmul %184, %3, %cst_58 {dimension_numbers = #tpu.dot_dimension_numbers<[1], [0], [0], [1], [0, 0, 1, 1], [], []>} : vector<2x32xbf16>, vector<32x96xbf16>, vector<2x96xf32> -> vector<2x96xf32>
    %186 = vector.extract_strided_slice %183 {offsets = [0, 0], sizes = [2, 32], strides = [1, 1]} : vector<2x96xf32> to vector<2x32xf32>
    %187 = vector.extract_strided_slice %185 {offsets = [0, 0], sizes = [2, 32], strides = [1, 1]} : vector<2x96xf32> to vector<2x32xf32>
    %188 = arith.addf %186, %187 : vector<2x32xf32>
    %189 = arith.negf %188 : vector<2x32xf32>
    %190 = math.exp %189 : vector<2x32xf32>
    %cst_59 = arith.constant 1.000000e+00 : f32
    %191 = vector.broadcast %cst_59 : f32 to vector<2x32xf32>
    %192 = arith.addf %191, %190 : vector<2x32xf32>
    %193 = arith.divf %191, %192 : vector<2x32xf32>
    %194 = vector.extract_strided_slice %183 {offsets = [0, 32], sizes = [2, 32], strides = [1, 1]} : vector<2x96xf32> to vector<2x32xf32>
    %195 = vector.extract_strided_slice %185 {offsets = [0, 32], sizes = [2, 32], strides = [1, 1]} : vector<2x96xf32> to vector<2x32xf32>
    %196 = arith.addf %194, %195 : vector<2x32xf32>
    %197 = arith.negf %196 : vector<2x32xf32>
    %198 = math.exp %197 : vector<2x32xf32>
    %cst_60 = arith.constant 1.000000e+00 : f32
    %199 = vector.broadcast %cst_60 : f32 to vector<2x32xf32>
    %200 = arith.addf %199, %198 : vector<2x32xf32>
    %201 = arith.divf %199, %200 : vector<2x32xf32>
    %202 = vector.extract_strided_slice %183 {offsets = [0, 64], sizes = [2, 32], strides = [1, 1]} : vector<2x96xf32> to vector<2x32xf32>
    %203 = vector.extract_strided_slice %185 {offsets = [0, 64], sizes = [2, 32], strides = [1, 1]} : vector<2x96xf32> to vector<2x32xf32>
    %204 = vector.broadcast %4 : vector<1x32xf32> to vector<2x32xf32>
    %205 = arith.addf %203, %204 : vector<2x32xf32>
    %206 = arith.mulf %193, %205 : vector<2x32xf32>
    %207 = arith.addf %202, %206 : vector<2x32xf32>
    %208 = math.tanh %207 : vector<2x32xf32>
    %cst_61 = arith.constant 1.000000e+00 : f32
    %209 = vector.broadcast %cst_61 : f32 to vector<2x32xf32>
    %210 = arith.subf %209, %201 : vector<2x32xf32>
    %211 = arith.mulf %210, %208 : vector<2x32xf32>
    %212 = arith.mulf %201, %180 : vector<2x32xf32>
    %213 = arith.addf %211, %212 : vector<2x32xf32>
    %c0_62 = arith.constant 0 : index
    %c0_63 = arith.constant 0 : index
    %214 = vector.load %arg5[%c0_62, %c0_63] : memref<2x32xf32, #tpu.memory_space<vmem>>, vector<2x32xf32>
    tpu.vector_store %arg5[%c0_62, %c0_63], %213 {strides = array<i32>} : memref<2x32xf32, #tpu.memory_space<vmem>>, vector<2x32xf32>,
    %c6_i32 = arith.constant 6 : i32
    %c0_64 = arith.constant 0 : index
    %c0_65 = arith.constant 0 : index
    %215 = vector.load %arg5[%c0_64, %c0_65] : memref<2x32xf32, #tpu.memory_space<vmem>>, vector<2x32xf32>
    %216 = arith.index_cast %c6_i32 : i32 to index
    %c0_66 = arith.constant 0 : index
    %c0_67 = arith.constant 0 : index
    %217 = vector.load %arg1[%216, %c0_66, %c0_67] : memref<8x2x96xf32, #tpu.memory_space<vmem>>, vector<1x2x96xf32>
    %218 = vector.shape_cast %217 : vector<1x2x96xf32> to vector<2x96xf32>
    %219 = arith.truncf %215 : vector<2x32xf32> to vector<2x32xbf16>
    %cst_68 = arith.constant dense<0.000000e+00> : vector<2x96xf32>
    %220 = tpu.matmul %219, %3, %cst_68 {dimension_numbers = #tpu.dot_dimension_numbers<[1], [0], [0], [1], [0, 0, 1, 1], [], []>} : vector<2x32xbf16>, vector<32x96xbf16>, vector<2x96xf32> -> vector<2x96xf32>
    %221 = vector.extract_strided_slice %218 {offsets = [0, 0], sizes = [2, 32], strides = [1, 1]} : vector<2x96xf32> to vector<2x32xf32>
    %222 = vector.extract_strided_slice %220 {offsets = [0, 0], sizes = [2, 32], strides = [1, 1]} : vector<2x96xf32> to vector<2x32xf32>
    %223 = arith.addf %221, %222 : vector<2x32xf32>
    %224 = arith.negf %223 : vector<2x32xf32>
    %225 = math.exp %224 : vector<2x32xf32>
    %cst_69 = arith.constant 1.000000e+00 : f32
    %226 = vector.broadcast %cst_69 : f32 to vector<2x32xf32>
    %227 = arith.addf %226, %225 : vector<2x32xf32>
    %228 = arith.divf %226, %227 : vector<2x32xf32>
    %229 = vector.extract_strided_slice %218 {offsets = [0, 32], sizes = [2, 32], strides = [1, 1]} : vector<2x96xf32> to vector<2x32xf32>
    %230 = vector.extract_strided_slice %220 {offsets = [0, 32], sizes = [2, 32], strides = [1, 1]} : vector<2x96xf32> to vector<2x32xf32>
    %231 = arith.addf %229, %230 : vector<2x32xf32>
    %232 = arith.negf %231 : vector<2x32xf32>
    %233 = math.exp %232 : vector<2x32xf32>
    %cst_70 = arith.constant 1.000000e+00 : f32
    %234 = vector.broadcast %cst_70 : f32 to vector<2x32xf32>
    %235 = arith.addf %234, %233 : vector<2x32xf32>
    %236 = arith.divf %234, %235 : vector<2x32xf32>
    %237 = vector.extract_strided_slice %218 {offsets = [0, 64], sizes = [2, 32], strides = [1, 1]} : vector<2x96xf32> to vector<2x32xf32>
    %238 = vector.extract_strided_slice %220 {offsets = [0, 64], sizes = [2, 32], strides = [1, 1]} : vector<2x96xf32> to vector<2x32xf32>
    %239 = vector.broadcast %4 : vector<1x32xf32> to vector<2x32xf32>
    %240 = arith.addf %238, %239 : vector<2x32xf32>
    %241 = arith.mulf %228, %240 : vector<2x32xf32>
    %242 = arith.addf %237, %241 : vector<2x32xf32>
    %243 = math.tanh %242 : vector<2x32xf32>
    %cst_71 = arith.constant 1.000000e+00 : f32
    %244 = vector.broadcast %cst_71 : f32 to vector<2x32xf32>
    %245 = arith.subf %244, %236 : vector<2x32xf32>
    %246 = arith.mulf %245, %243 : vector<2x32xf32>
    %247 = arith.mulf %236, %215 : vector<2x32xf32>
    %248 = arith.addf %246, %247 : vector<2x32xf32>
    %c0_72 = arith.constant 0 : index
    %c0_73 = arith.constant 0 : index
    %249 = vector.load %arg5[%c0_72, %c0_73] : memref<2x32xf32, #tpu.memory_space<vmem>>, vector<2x32xf32>
    tpu.vector_store %arg5[%c0_72, %c0_73], %248 {strides = array<i32>} : memref<2x32xf32, #tpu.memory_space<vmem>>, vector<2x32xf32>,
    %c7_i32 = arith.constant 7 : i32
    %c0_74 = arith.constant 0 : index
    %c0_75 = arith.constant 0 : index
    %250 = vector.load %arg5[%c0_74, %c0_75] : memref<2x32xf32, #tpu.memory_space<vmem>>, vector<2x32xf32>
    %251 = arith.index_cast %c7_i32 : i32 to index
    %c0_76 = arith.constant 0 : index
    %c0_77 = arith.constant 0 : index
    %252 = vector.load %arg1[%251, %c0_76, %c0_77] : memref<8x2x96xf32, #tpu.memory_space<vmem>>, vector<1x2x96xf32>
    %253 = vector.shape_cast %252 : vector<1x2x96xf32> to vector<2x96xf32>
    %254 = arith.truncf %250 : vector<2x32xf32> to vector<2x32xbf16>
    %cst_78 = arith.constant dense<0.000000e+00> : vector<2x96xf32>
    %255 = tpu.matmul %254, %3, %cst_78 {dimension_numbers = #tpu.dot_dimension_numbers<[1], [0], [0], [1], [0, 0, 1, 1], [], []>} : vector<2x32xbf16>, vector<32x96xbf16>, vector<2x96xf32> -> vector<2x96xf32>
    %256 = vector.extract_strided_slice %253 {offsets = [0, 0], sizes = [2, 32], strides = [1, 1]} : vector<2x96xf32> to vector<2x32xf32>
    %257 = vector.extract_strided_slice %255 {offsets = [0, 0], sizes = [2, 32], strides = [1, 1]} : vector<2x96xf32> to vector<2x32xf32>
    %258 = arith.addf %256, %257 : vector<2x32xf32>
    %259 = arith.negf %258 : vector<2x32xf32>
    %260 = math.exp %259 : vector<2x32xf32>
    %cst_79 = arith.constant 1.000000e+00 : f32
    %261 = vector.broadcast %cst_79 : f32 to vector<2x32xf32>
    %262 = arith.addf %261, %260 : vector<2x32xf32>
    %263 = arith.divf %261, %262 : vector<2x32xf32>
    %264 = vector.extract_strided_slice %253 {offsets = [0, 32], sizes = [2, 32], strides = [1, 1]} : vector<2x96xf32> to vector<2x32xf32>
    %265 = vector.extract_strided_slice %255 {offsets = [0, 32], sizes = [2, 32], strides = [1, 1]} : vector<2x96xf32> to vector<2x32xf32>
    %266 = arith.addf %264, %265 : vector<2x32xf32>
    %267 = arith.negf %266 : vector<2x32xf32>
    %268 = math.exp %267 : vector<2x32xf32>
    %cst_80 = arith.constant 1.000000e+00 : f32
    %269 = vector.broadcast %cst_80 : f32 to vector<2x32xf32>
    %270 = arith.addf %269, %268 : vector<2x32xf32>
    %271 = arith.divf %269, %270 : vector<2x32xf32>
    %272 = vector.extract_strided_slice %253 {offsets = [0, 64], sizes = [2, 32], strides = [1, 1]} : vector<2x96xf32> to vector<2x32xf32>
    %273 = vector.extract_strided_slice %255 {offsets = [0, 64], sizes = [2, 32], strides = [1, 1]} : vector<2x96xf32> to vector<2x32xf32>
    %274 = vector.broadcast %4 : vector<1x32xf32> to vector<2x32xf32>
    %275 = arith.addf %273, %274 : vector<2x32xf32>
    %276 = arith.mulf %263, %275 : vector<2x32xf32>
    %277 = arith.addf %272, %276 : vector<2x32xf32>
    %278 = math.tanh %277 : vector<2x32xf32>
    %cst_81 = arith.constant 1.000000e+00 : f32
    %279 = vector.broadcast %cst_81 : f32 to vector<2x32xf32>
    %280 = arith.subf %279, %271 : vector<2x32xf32>
    %281 = arith.mulf %280, %278 : vector<2x32xf32>
    %282 = arith.mulf %271, %250 : vector<2x32xf32>
    %283 = arith.addf %281, %282 : vector<2x32xf32>
    %c0_82 = arith.constant 0 : index
    %c0_83 = arith.constant 0 : index
    %284 = vector.load %arg5[%c0_82, %c0_83] : memref<2x32xf32, #tpu.memory_space<vmem>>, vector<2x32xf32>
    tpu.vector_store %arg5[%c0_82, %c0_83], %283 {strides = array<i32>} : memref<2x32xf32, #tpu.memory_space<vmem>>, vector<2x32xf32>,
    %c8_i32 = arith.constant 8 : i32
    %c0_84 = arith.constant 0 : index
    %c0_85 = arith.constant 0 : index
    %285 = vector.load %arg5[%c0_84, %c0_85] : memref<2x32xf32, #tpu.memory_space<vmem>>, vector<2x32xf32>
    %c0_86 = arith.constant 0 : index
    %c0_87 = arith.constant 0 : index
    %286 = vector.load %arg4[%c0_86, %c0_87] : memref<2x32xf32, #tpu.memory_space<vmem>>, vector<2x32xf32>
    tpu.vector_store %arg4[%c0_86, %c0_87], %285 {strides = array<i32>} : memref<2x32xf32, #tpu.memory_space<vmem>>, vector<2x32xf32>,
    return
  }
  func.func @transform_0(%arg0: i32) -> (i32, i32, i32) {
    %c0_i32 = arith.constant 0 : i32
    %c0_i32_0 = arith.constant 0 : i32
    %c0_i32_1 = arith.constant 0 : i32
    return %arg0, %c0_i32, %c0_i32_0 : i32, i32, i32
  }
  func.func @transform_1(%arg0: i32) -> (i32, i32) {
    %c0_i32 = arith.constant 0 : i32
    %c0_i32_0 = arith.constant 0 : i32
    %c0_i32_1 = arith.constant 0 : i32
    return %c0_i32, %c0_i32_0 : i32, i32
  }
  func.func @transform_2(%arg0: i32) -> (i32, i32) {
    %c0_i32 = arith.constant 0 : i32
    %c0_i32_0 = arith.constant 0 : i32
    %c0_i32_1 = arith.constant 0 : i32
    return %c0_i32, %c0_i32_0 : i32, i32
  }
  func.func @transform_3(%arg0: i32) -> (i32, i32) {
    %c0_i32 = arith.constant 0 : i32
    %c0_i32_0 = arith.constant 0 : i32
    %c0_i32_1 = arith.constant 0 : i32
    return %c0_i32, %c0_i32_0 : i32, i32
  }
}

module attributes {stable_mosaic.version = 11 : i64} {
  func.func @linear_kernel(%arg0: memref<2x32xf32, #tpu.memory_space<vmem>>, %arg1: memref<32x4xf32, #tpu.memory_space<vmem>>, %arg2: memref<1x4xf32, #tpu.memory_space<vmem>>, %arg3: memref<2x4xf32, #tpu.memory_space<vmem>>) attributes {dimension_semantics = [], scalar_prefetch = 0 : i64, scratch_operands = 0 : i64, tpu.core_type = #tpu.core_type<tc>} {
    %c0 = arith.constant 0 : index
    %c0_0 = arith.constant 0 : index
    %0 = vector.load %arg0[%c0, %c0_0] : memref<2x32xf32, #tpu.memory_space<vmem>>, vector<2x32xf32>
    %c0_1 = arith.constant 0 : index
    %c0_2 = arith.constant 0 : index
    %1 = vector.load %arg1[%c0_1, %c0_2] : memref<32x4xf32, #tpu.memory_space<vmem>>, vector<32x4xf32>
    %cst = arith.constant dense<0.000000e+00> : vector<2x4xf32>
    %2 = tpu.matmul %0, %1, %cst {dimension_numbers = #tpu.dot_dimension_numbers<[1], [0], [0], [1], [0, 0, 1, 1], [], []>} : vector<2x32xf32>, vector<32x4xf32>, vector<2x4xf32> -> vector<2x4xf32>
    %c0_3 = arith.constant 0 : index
    %c0_4 = arith.constant 0 : index
    %3 = vector.load %arg2[%c0_3, %c0_4] : memref<1x4xf32, #tpu.memory_space<vmem>>, vector<1x4xf32>
    %4 = vector.broadcast %3 : vector<1x4xf32> to vector<2x4xf32>
    %5 = arith.addf %2, %4 : vector<2x4xf32>
    %c0_5 = arith.constant 0 : index
    %c0_6 = arith.constant 0 : index
    %6 = vector.load %arg3[%c0_5, %c0_6] : memref<2x4xf32, #tpu.memory_space<vmem>>, vector<2x4xf32>
    tpu.vector_store %arg3[%c0_5, %c0_6], %5 {strides = array<i32>} : memref<2x4xf32, #tpu.memory_space<vmem>>, vector<2x4xf32>,
    return
  }
}

</mosaic_0001>

<bundles_post_ra>
// kernel: gru_model_forward.5
= control target key start
LH: loop header
LB: loop body
LE: loop exit
PB: predicated region body
PF: predicated region fallthrough
CT: control target
= control target key end

     0   :  { %v99_v0 = vmov 0.0   ;;  %vm100_vm0 = vmmov 0   ;;  %vm33_vm1 = vcmask 130048   ;;  %vm78_vm2 = vcmask 785408   ;;  %s139_s1 = inlined_call_operand.vmem [shape: bf16[16,96], index: 1, kind: input, shape index: {}]   ;;  %s140_s0 = inlined_call_operand.vmem [shape: f32[16,16], index: 0, kind: input, shape index: {}]   ;;  %s141_s2 = inlined_call_operand.vmem [shape: f32[1,96], index: 2, kind: input, shape index: {}]   ;;  %s142_s3 = inlined_call_operand.vmem [shape: f32[16,96], index: 3, kind: output, shape index: {}]  }
   0x1   :  { %90 = vmatprep.subr.bf16.mxu0 %v99_v0  ;;  %v98_v1 = vld [vmem:[%s139_s1] sm:$0xff]   ;;  %92 = vmatprep.mubr.msk.bf16.mxu0 %vm100_vm0, %v99_v0  ;;  %v16_v3 = vld [vmem:[%s140_s0 + $0x8] sm:$0xff] }
   0x2   :  { %v15_v2 = vld [vmem:[%s140_s0] sm:$0xff]  ;;  %91 = vmatpush3.bf16.msra.mxu0 %v98_v1 }
   0x3   :  { %v17_v4 = vpack.c.bf16 %v16_v3, %v15_v2  ;;  %v85_v5 = vld [vmem:[%s141_s2] ss:$0 sm:$0xff] }
   0x5   :  { %93 = vmatmul.mubr.msk.bf16.vlgmr.msra.gmra.mxu0 %vm33_vm1, %v17_v4 }
  0xc5   :  { %v71_v6 = vpop.f32.mrf.mxu0 }
  0xc6   :  { %v72_v7 = vadd.f32 %v85_v5, %v71_v6 }
  0xc7   :  { %v94_v8 = vpop.f32.mrf.mxu0 }
  0xc8   :  { %79 = vst.msk [vmem:[%s142_s3] sm:$0xff] %vm78_vm2, %v72_v7 }
  0xc9   :  { %v74_v9 = vpop.f32.mrf.mxu0 }
  0xca   :  { %v75_v10 = vadd.f32 %v85_v5, %v74_v9 }
  0xcb   :  { %v95_v11 = vpop.f32.mrf.mxu0 }
  0xcc   :  { %80 = vst.msk [vmem:[%s142_s3 + $0x8] sm:$0xff] %vm78_vm2, %v75_v10 }

// kernel: gru_model_forward.7
= control target key start
LH: loop header
LB: loop body
LE: loop exit
PB: predicated region body
PF: predicated region fallthrough
CT: control target
= control target key end

     0   :  { %v112_v0 = vmov 0.0   ;;  %vm113_vm0 = vmmov 0   ;;  %vm41_vm1 = vcmask 261120   ;;  %vm86_vm2 = vcmask 785408   ;;  %s155_s1 = inlined_call_operand.vmem [shape: bf16[32,96], index: 1, kind: input, shape index: {}]   ;;  %s156_s0 = inlined_call_operand.vmem [shape: f32[16,32], index: 0, kind: input, shape index: {}]   ;;  %s157_s2 = inlined_call_operand.vmem [shape: f32[1,96], index: 2, kind: input, shape index: {}]   ;;  %s158_s3 = inlined_call_operand.vmem [shape: f32[16,96], index: 3, kind: output, shape index: {}]  }
   0x1   :  { %100 = vmatprep.subr.bf16.mxu0 %v112_v0  ;;  %v110_v1 = vld [vmem:[%s155_s1 + $0x8] sm:$0xff]   ;;  %104 = vmatprep.mubr.msk.bf16.mxu0 %vm113_vm0, %v112_v0  ;;  %v111_v2 = vld [vmem:[%s155_s1] sm:$0xff]  }
   0x2   :  { %101 = vmatpush3.bf16.msra.mxu0 %v110_v1  ;;  %v15_v3 = vld [vmem:[%s156_s0] sm:$0xff]  ;;  %v16_v4 = vld [vmem:[%s156_s0 + $0x8] sm:$0xff] }
   0x3   :  { %102 = vmatprep.subr.bf16.mxu0 %v112_v0  ;;  %v17_v5 = vpack.c.bf16 %v16_v4, %v15_v3  ;;  %v93_v6 = vld [vmem:[%s157_s2] ss:$0 sm:$0xff] }
   0x6   :  { %103 = vmatpush3.bf16.msra.mxu0 %v111_v2 }
   0x9   :  { %105 = vmatmul.mubr.msk.bf16.vlgmr.msra.gmra.mxu0 %vm41_vm1, %v17_v5 }
  0xc9   :  { %v79_v7 = vpop.f32.mrf.mxu0 }
  0xca   :  { %v80_v8 = vadd.f32 %v93_v6, %v79_v7 }
  0xcb   :  { %v106_v9 = vpop.f32.mrf.mxu0 }
  0xcc   :  { %87 = vst.msk [vmem:[%s158_s3] sm:$0xff] %vm86_vm2, %v80_v8 }
  0xcd   :  { %v82_v10 = vpop.f32.mrf.mxu0 }
  0xce   :  { %v83_v11 = vadd.f32 %v93_v6, %v82_v10 }
  0xcf   :  { %v107_v12 = vpop.f32.mrf.mxu0 }
  0xd0   :  { %88 = vst.msk [vmem:[%s158_s3 + $0x8] sm:$0xff] %vm86_vm2, %v83_v11 }

// kernel: gru_model_forward.6
= control target key start
LH: loop header
LB: loop body
LE: loop exit
PB: predicated region body
PF: predicated region fallthrough
CT: control target
= control target key end

     0   :  { %vm19_vm0 = vcmask 254976   ;;  %v906_v0 = vmov 0.0   ;;  %vm907_vm1 = vmmov 0   ;;  %s908_s18 = smov 64   ;;  %vm41_vm2 = vcmask 261120   ;;  %s910_s20 = smov 96   ;;  %s1117_s1 = inlined_call_operand.vmem [shape: bf16[32,96], index: 1, kind: input, shape index: {}]   ;;  %s1118_s2 = inlined_call_operand.vmem [shape: f32[1,32], index: 2, kind: input, shape index: {}]   ;;  %s1119_s0 = inlined_call_operand.vmem [shape: f32[8,2,96], index: 0, kind: input, shape index: {}]   ;;  %s1120_s3 = inlined_call_operand.vmem [shape: f32[8,2,32], index: 3, kind: output, shape index: {}]  }
   0x1   :  { %787 = vmatprep.subr.bf16.mxu0 %v906_v0  ;;  %v935_v1 = vld [vmem:[%s1117_s1 + $0x8] sm:$0xff]   ;;  %791 = vmatprep.mubr.msk.bf16.mxu0 %vm907_vm1, %v906_v0  ;;  %20 = vst.msk [vmem:[#allocation2] sm:$0x3] %vm19_vm0, %v906_v0  ;;  %v948_v2 = vld [vmem:[%s1117_s1] sm:$0xff]   ;;  %s909_s1 = smov 32  }
   0x2   :  { %795 = vmatprep.subr.bf16.mxu1 %v906_v0  ;;  %799 = vmatprep.mubr.msk.bf16.mxu1 %vm907_vm1, %v906_v0  ;;  %v734_v3 = vld [vmem:[%s1118_s2] ss:$0 sm:$0xff]  ;;  %v735_v37 = vld [vmem:[%s1119_s0 + $0x2] sm:$0x3]  ;;  %v739_v62 = vld [vmem:[%s1119_s0 + $0x4] sm:$0x3] }
   0x3   :  { %788 = vmatpush3.bf16.msra.mxu0 %v935_v1  ;;  %796 = vmatpush3.bf16.msra.mxu1 %v935_v1  ;;  %v27_v12 = vld [vmem:[%s1119_s0] sm:$0x3] }
   0x4   :  { %789 = vmatprep.subr.bf16.mxu0 %v906_v0  ;;  %97 = vrot.lane.b32.xlu0 %v734_v3, %s908_s18 }
   0x5   :  { %797 = vmatprep.subr.bf16.mxu1 %v906_v0 }
   0x7   :  { %790 = vmatpush3.bf16.msra.mxu0 %v948_v2  ;;  %798 = vmatpush3.bf16.msra.mxu1 %v948_v2 }
   0x8   :  { %v26_v4 = vld [vmem:[#allocation2] sm:$0x3]  ;;  %803 = vmatprep.subr.bf16.mxu0 %v906_v0  ;;  %811 = vmatprep.subr.bf16.mxu1 %v906_v0 }
   0x9   :  { %v28_v5 = vpack.c.bf16 %v26_v4, %v26_v4 }
   0xb   :  { %792 = vmatmul.mubr.msk.bf16.vlgmr.msra.gmra.mxu0 %vm41_vm2, %v28_v5 }
   0xc   :  { %804 = vmatpush3.bf16.msra.mxu0 %v935_v1  ;;  %807 = vmatprep.mubr.msk.bf16.mxu0 %vm907_vm1, %v906_v0 }
   0xd   :  { %805 = vmatprep.subr.bf16.mxu0 %v906_v0 }
  0x10   :  { %806 = vmatpush3.bf16.msra.mxu0 %v948_v2 }
  0x11   :  { %819 = vmatprep.subr.bf16.mxu0 %v906_v0 }
  0x76   :  { %v968_v6 = vpop.permute.xlu0 %97 }
  0xcb   :  { %v79_v7 = vpop.f32.mrf.mxu0 }
  0xcc   :  { %v100_v8 = vadd.f32 %v968_v6, %v79_v7  ;;  %v85_v13 = vadd.f32 %v79_v7, %v27_v12 }
  0xcd   :  { %v793_v9 = vpop.f32.mrf.mxu0 }
  0xce   :  { %102 = vrot.lane.b32.xlu0 %v100_v8, %s908_s18  ;;  %v733_v14 = vmul.f32 -1.442695, %v85_v13 }
  0xcf   :  { %v82_v10 = vpop.f32.mrf.mxu0 }
  0xd0   :  { %858 = vpow2.f32 %v733_v14 }
  0xd1   :  { %v794_v11 = vpop.f32.mrf.mxu0 }
  0xd2   :  { %119 = vrot.lane.b32.xlu0 %v26_v4, %s909_s1 }
  0xdd   :  { %v859_v15 = vpop.eup %858 }
  0xde   :  { %v89_v16 = vadd.f32 1.0, %v859_v15 }
  0xe0   :  { %860 = vrcp.f32 %v89_v16 }
  0xed   :  { %v861_v17 = vpop.eup %860 }
  0xee   :  { %v112_v24 = vsub.f32 1.0, %v861_v17 }
 0x140   :  { %v103_v18 = vpop.permute.xlu0 %102 }
 0x141   :  { %v105_v19 = vmul.f32 %v861_v17, %v103_v18 }
 0x143   :  { %107 = vrot.lane.b32.xlu1 %v105_v19, %s908_s18 }
 0x144   :  { %v120_v23 = vpop.permute.xlu0 %119 }
 0x145   :  { %v122_v26 = vmul.f32 %v861_v17, %v120_v23 }
 0x1b5   :  { %v108_v20 = vpop.permute.xlu1 %107 }
 0x1b6   :  { %v110_v21 = vadd.f32 %v108_v20, %v27_v12 }
 0x1b8   :  { %862 = vtanh.f32 %v110_v21 }
 0x1c5   :  { %v863_v22 = vpop.eup %862 }
 0x1c6   :  { %114 = vrot.lane.b32.xlu1 %v863_v22, %s910_s20 }
 0x238   :  { %v115_v25 = vpop.permute.xlu1 %114 }
 0x239   :  { %v117_v27 = vmul.f32 %v115_v25, %v112_v24 }
 0x23b   :  { %v123_v28 = vadd.f32 %v122_v26, %v117_v27  ;;  %v743_v27 = vld [vmem:[%s1119_s0 + $0x6] sm:$0x3] }
 0x23d   :  { %125 = vrot.lane.b32.xlu1 %v123_v28, %s910_s20 }
 0x2af   :  { %v126_v29 = vpop.permute.xlu1 %125 }
 0x2b0   :  { %129 = vst.msk [vmem:[#allocation2] sm:$0x3] %vm19_vm0, %v126_v29  ;;  %130 = vst.msk [vmem:[%s1120_s3] sm:$0x3] %vm19_vm0, %v126_v29 }
 0x2b7   :  { %v131_v30 = vld [vmem:[#allocation2] sm:$0x3] }
 0x2b8   :  { %v134_v31 = vpack.c.bf16 %v131_v30, %v131_v30 }
 0x2ba   :  { %800 = vmatmul.mubr.msk.bf16.vlgmr.msra.gmra.mxu1 %vm41_vm2, %v134_v31 }
 0x2bb   :  { %812 = vmatpush3.bf16.msra.mxu1 %v935_v1  ;;  %815 = vmatprep.mubr.msk.bf16.mxu1 %vm907_vm1, %v906_v0 }
 0x2bc   :  { %813 = vmatprep.subr.bf16.mxu1 %v906_v0 }
 0x2bf   :  { %814 = vmatpush3.bf16.msra.mxu1 %v948_v2 }
 0x2c0   :  { %827 = vmatprep.subr.bf16.mxu1 %v906_v0 }
 0x37a   :  { %v172_v32 = vpop.f32.mrf.mxu1 }
 0x37b   :  { %v185_v33 = vadd.f32 %v172_v32, %v968_v6  ;;  %v178_v38 = vadd.f32 %v735_v37, %v172_v32 }
 0x37c   :  { %v801_v34 = vpop.f32.mrf.mxu1 }
 0x37d   :  { %187 = vrot.lane.b32.xlu0 %v185_v33, %s908_s18  ;;  %v737_v39 = vmul.f32 -1.442695, %v178_v38 }
 0x37e   :  { %v175_v35 = vpop.f32.mrf.mxu1 }
 0x37f   :  { %864 = vpow2.f32 %v737_v39 }
 0x380   :  { %v802_v36 = vpop.f32.mrf.mxu1 }
 0x38c   :  { %v865_v40 = vpop.eup %864 }
 0x38d   :  { %v182_v41 = vadd.f32 1.0, %v865_v40 }
 0x38f   :  { %866 = vrcp.f32 %v182_v41 }
 0x39c   :  { %v867_v42 = vpop.eup %866 }
 0x39d   :  { %v197_v49 = vsub.f32 1.0, %v867_v42 }
 0x3ef   :  { %v188_v43 = vpop.permute.xlu0 %187 }
 0x3f0   :  { %v190_v44 = vmul.f32 %v867_v42, %v188_v43 }
 0x3f2   :  { %192 = vrot.lane.b32.xlu1 %v190_v44, %s908_s18 }
 0x3f6   :  { %204 = vrot.lane.b32.xlu1 %v131_v30, %s909_s1 }
 0x464   :  { %v193_v45 = vpop.permute.xlu1 %192 }
 0x465   :  { %v195_v46 = vadd.f32 %v735_v37, %v193_v45 }
 0x467   :  { %868 = vtanh.f32 %v195_v46 }
 0x468   :  { %v205_v48 = vpop.permute.xlu1 %204 }
 0x469   :  { %v207_v51 = vmul.f32 %v867_v42, %v205_v48 }
 0x474   :  { %v869_v47 = vpop.eup %868 }
 0x475   :  { %199 = vrot.lane.b32.xlu0 %v869_v47, %s910_s20 }
 0x4e7   :  { %v200_v50 = vpop.permute.xlu0 %199 }
 0x4e8   :  { %v202_v52 = vmul.f32 %v200_v50, %v197_v49 }
 0x4ea   :  { %v208_v53 = vadd.f32 %v207_v51, %v202_v52  ;;  %v747_v52 = vld [vmem:[%s1119_s0 + $0x8] sm:$0x3] }
 0x4ec   :  { %210 = vrot.lane.b32.xlu0 %v208_v53, %s910_s20 }
 0x55e   :  { %v211_v54 = vpop.permute.xlu0 %210 }
 0x55f   :  { %213 = vst.msk [vmem:[#allocation2] sm:$0x3] %vm19_vm0, %v211_v54  ;;  %738 = vst.msk [vmem:[%s1120_s3 + $0x2] sm:$0x3] %vm19_vm0, %v211_v54 }
 0x566   :  { %v216_v55 = vld [vmem:[#allocation2] sm:$0x3] }
 0x567   :  { %v219_v56 = vpack.c.bf16 %v216_v55, %v216_v55 }
 0x569   :  { %808 = vmatmul.mubr.msk.bf16.vlgmr.msra.gmra.mxu0 %vm41_vm2, %v219_v56 }
 0x56a   :  { %820 = vmatpush3.bf16.msra.mxu0 %v935_v1  ;;  %823 = vmatprep.mubr.msk.bf16.mxu0 %vm907_vm1, %v906_v0 }
 0x56b   :  { %821 = vmatprep.subr.bf16.mxu0 %v906_v0 }
 0x56e   :  { %822 = vmatpush3.bf16.msra.mxu0 %v948_v2 }
 0x56f   :  { %835 = vmatprep.subr.bf16.mxu0 %v906_v0 }
 0x629   :  { %v257_v57 = vpop.f32.mrf.mxu0 }
 0x62a   :  { %v270_v58 = vadd.f32 %v257_v57, %v968_v6  ;;  %v263_v63 = vadd.f32 %v739_v62, %v257_v57 }
 0x62b   :  { %v809_v59 = vpop.f32.mrf.mxu0 }
 0x62c   :  { %272 = vrot.lane.b32.xlu1 %v270_v58, %s908_s18  ;;  %v741_v3 = vmul.f32 -1.442695, %v263_v63 }
 0x62d   :  { %v260_v60 = vpop.f32.mrf.mxu0 }
 0x62e   :  { %870 = vpow2.f32 %v741_v3 }
 0x62f   :  { %v810_v61 = vpop.f32.mrf.mxu0 }
 0x63b   :  { %v871_v4 = vpop.eup %870 }
 0x63c   :  { %v267_v5 = vadd.f32 1.0, %v871_v4 }
 0x63e   :  { %872 = vrcp.f32 %v267_v5 }
 0x64b   :  { %v873_v7 = vpop.eup %872 }
 0x64c   :  { %v282_v14 = vsub.f32 1.0, %v873_v7 }
 0x69e   :  { %v273_v8 = vpop.permute.xlu1 %272 }
 0x69f   :  { %v275_v9 = vmul.f32 %v873_v7, %v273_v8 }
 0x6a1   :  { %277 = vrot.lane.b32.xlu0 %v275_v9, %s908_s18 }
 0x6a5   :  { %289 = vrot.lane.b32.xlu0 %v216_v55, %s909_s1 }
 0x713   :  { %v278_v10 = vpop.permute.xlu0 %277 }
 0x714   :  { %v280_v11 = vadd.f32 %v739_v62, %v278_v10 }
 0x716   :  { %874 = vtanh.f32 %v280_v11 }
 0x717   :  { %v290_v13 = vpop.permute.xlu0 %289 }
 0x718   :  { %v292_v16 = vmul.f32 %v873_v7, %v290_v13 }
 0x723   :  { %v875_v12 = vpop.eup %874 }
 0x724   :  { %284 = vrot.lane.b32.xlu1 %v875_v12, %s910_s20 }
 0x796   :  { %v285_v15 = vpop.permute.xlu1 %284 }
 0x797   :  { %v287_v17 = vmul.f32 %v285_v15, %v282_v14 }
 0x799   :  { %v293_v18 = vadd.f32 %v292_v16, %v287_v17  ;;  %v751_v17 = vld [vmem:[%s1119_s0 + $0xa] sm:$0x3] }
 0x79b   :  { %295 = vrot.lane.b32.xlu1 %v293_v18, %s910_s20 }
 0x80d   :  { %v296_v19 = vpop.permute.xlu1 %295 }
 0x80e   :  { %298 = vst.msk [vmem:[#allocation2] sm:$0x3] %vm19_vm0, %v296_v19  ;;  %742 = vst.msk [vmem:[%s1120_s3 + $0x4] sm:$0x3] %vm19_vm0, %v296_v19 }
 0x815   :  { %v301_v20 = vld [vmem:[#allocation2] sm:$0x3] }
 0x816   :  { %v304_v21 = vpack.c.bf16 %v301_v20, %v301_v20 }
 0x818   :  { %816 = vmatmul.mubr.msk.bf16.vlgmr.msra.gmra.mxu1 %vm41_vm2, %v304_v21 }
 0x819   :  { %828 = vmatpush3.bf16.msra.mxu1 %v935_v1  ;;  %831 = vmatprep.mubr.msk.bf16.mxu1 %vm907_vm1, %v906_v0 }
 0x81a   :  { %829 = vmatprep.subr.bf16.mxu1 %v906_v0 }
 0x81d   :  { %830 = vmatpush3.bf16.msra.mxu1 %v948_v2 }
 0x81e   :  { %843 = vmatprep.subr.bf16.mxu1 %v906_v0 }
 0x8d8   :  { %v342_v22 = vpop.f32.mrf.mxu1 }
 0x8d9   :  { %v355_v23 = vadd.f32 %v342_v22, %v968_v6  ;;  %v348_v28 = vadd.f32 %v743_v27, %v342_v22 }
 0x8da   :  { %v817_v24 = vpop.f32.mrf.mxu1 }
 0x8db   :  { %357 = vrot.lane.b32.xlu0 %v355_v23, %s908_s18  ;;  %v745_v29 = vmul.f32 -1.442695, %v348_v28 }
 0x8dc   :  { %v345_v25 = vpop.f32.mrf.mxu1 }
 0x8dd   :  { %876 = vpow2.f32 %v745_v29 }
 0x8de   :  { %v818_v26 = vpop.f32.mrf.mxu1 }
 0x8ea   :  { %v877_v30 = vpop.eup %876 }
 0x8eb   :  { %v352_v31 = vadd.f32 1.0, %v877_v30 }
 0x8ed   :  { %878 = vrcp.f32 %v352_v31 }
 0x8fa   :  { %v879_v32 = vpop.eup %878 }
 0x8fb   :  { %v367_v39 = vsub.f32 1.0, %v879_v32 }
 0x94d   :  { %v358_v33 = vpop.permute.xlu0 %357 }
 0x94e   :  { %v360_v34 = vmul.f32 %v879_v32, %v358_v33 }
 0x950   :  { %362 = vrot.lane.b32.xlu1 %v360_v34, %s908_s18 }
 0x954   :  { %374 = vrot.lane.b32.xlu1 %v301_v20, %s909_s1 }
 0x9c2   :  { %v363_v35 = vpop.permute.xlu1 %362 }
 0x9c3   :  { %v365_v36 = vadd.f32 %v743_v27, %v363_v35 }
 0x9c5   :  { %880 = vtanh.f32 %v365_v36 }
 0x9c6   :  { %v375_v38 = vpop.permute.xlu1 %374 }
 0x9c7   :  { %v377_v41 = vmul.f32 %v879_v32, %v375_v38 }
 0x9d2   :  { %v881_v37 = vpop.eup %880 }
 0x9d3   :  { %369 = vrot.lane.b32.xlu0 %v881_v37, %s910_s20 }
 0xa45   :  { %v370_v40 = vpop.permute.xlu0 %369 }
 0xa46   :  { %v372_v42 = vmul.f32 %v370_v40, %v367_v39  ;;  %v755_v39 = vld [vmem:[%s1119_s0 + $0xc] sm:$0x3] }
 0xa48   :  { %v378_v43 = vadd.f32 %v377_v41, %v372_v42 }
 0xa4a   :  { %380 = vrot.lane.b32.xlu0 %v378_v43, %s910_s20 }
 0xabc   :  { %v381_v44 = vpop.permute.xlu0 %380 }
 0xabd   :  { %383 = vst.msk [vmem:[#allocation2] sm:$0x3] %vm19_vm0, %v381_v44  ;;  %746 = vst.msk [vmem:[%s1120_s3 + $0x6] sm:$0x3] %vm19_vm0, %v381_v44 }
 0xac4   :  { %v386_v45 = vld [vmem:[#allocation2] sm:$0x3] }
 0xac5   :  { %v389_v46 = vpack.c.bf16 %v386_v45, %v386_v45 }
 0xac7   :  { %824 = vmatmul.mubr.msk.bf16.vlgmr.msra.gmra.mxu0 %vm41_vm2, %v389_v46 }
 0xac8   :  { %836 = vmatpush3.bf16.msra.mxu0 %v935_v1  ;;  %839 = vmatprep.mubr.msk.bf16.mxu0 %vm907_vm1, %v906_v0 }
 0xac9   :  { %837 = vmatprep.subr.bf16.mxu0 %v906_v0 }
 0xacc   :  { %838 = vmatpush3.bf16.msra.mxu0 %v948_v2 }
 0xb87   :  { %v427_v47 = vpop.f32.mrf.mxu0 }
 0xb88   :  { %v440_v48 = vadd.f32 %v427_v47, %v968_v6  ;;  %v433_v53 = vadd.f32 %v747_v52, %v427_v47 }
 0xb89   :  { %v825_v49 = vpop.f32.mrf.mxu0 }
 0xb8a   :  { %442 = vrot.lane.b32.xlu1 %v440_v48, %s908_s18  ;;  %v749_v54 = vmul.f32 -1.442695, %v433_v53 }
 0xb8b   :  { %v430_v50 = vpop.f32.mrf.mxu0 }
 0xb8c   :  { %882 = vpow2.f32 %v749_v54 }
 0xb8d   :  { %v826_v51 = vpop.f32.mrf.mxu0 }
 0xb99   :  { %v883_v55 = vpop.eup %882 }
 0xb9a   :  { %v437_v56 = vadd.f32 1.0, %v883_v55 }
 0xb9c   :  { %884 = vrcp.f32 %v437_v56 }
 0xba9   :  { %v885_v57 = vpop.eup %884 }
 0xbaa   :  { %v452_v3 = vsub.f32 1.0, %v885_v57 }
 0xbfc   :  { %v443_v58 = vpop.permute.xlu1 %442 }
 0xbfd   :  { %v445_v59 = vmul.f32 %v885_v57, %v443_v58 }
 0xbff   :  { %447 = vrot.lane.b32.xlu0 %v445_v59, %s908_s18 }
 0xc03   :  { %459 = vrot.lane.b32.xlu0 %v386_v45, %s909_s1 }
 0xc71   :  { %v448_v60 = vpop.permute.xlu0 %447 }
 0xc72   :  { %v450_v61 = vadd.f32 %v747_v52, %v448_v60 }
 0xc74   :  { %886 = vtanh.f32 %v450_v61 }
 0xc75   :  { %v460_v63 = vpop.permute.xlu0 %459 }
 0xc76   :  { %v462_v5 = vmul.f32 %v885_v57, %v460_v63 }
 0xc81   :  { %v887_v62 = vpop.eup %886 }
 0xc82   :  { %454 = vrot.lane.b32.xlu1 %v887_v62, %s910_s20 }
 0xcf4   :  { %v455_v4 = vpop.permute.xlu1 %454 }
 0xcf5   :  { %v457_v7 = vmul.f32 %v455_v4, %v452_v3  ;;  %v759_v3 = vld [vmem:[%s1119_s0 + $0xe] sm:$0x3] }
 0xcf7   :  { %v463_v8 = vadd.f32 %v462_v5, %v457_v7 }
 0xcf9   :  { %465 = vrot.lane.b32.xlu1 %v463_v8, %s910_s20 }
 0xd6b   :  { %v466_v9 = vpop.permute.xlu1 %465 }
 0xd6c   :  { %468 = vst.msk [vmem:[#allocation2] sm:$0x3] %vm19_vm0, %v466_v9  ;;  %750 = vst.msk [vmem:[%s1120_s3 + $0x8] sm:$0x3] %vm19_vm0, %v466_v9 }
 0xd73   :  { %v471_v10 = vld [vmem:[#allocation2] sm:$0x3] }
 0xd74   :  { %v474_v11 = vpack.c.bf16 %v471_v10, %v471_v10 }
 0xd76   :  { %832 = vmatmul.mubr.msk.bf16.vlgmr.msra.gmra.mxu1 %vm41_vm2, %v474_v11 }
 0xd77   :  { %844 = vmatpush3.bf16.msra.mxu1 %v935_v1  ;;  %847 = vmatprep.mubr.msk.bf16.mxu1 %vm907_vm1, %v906_v0 }
 0xd78   :  { %845 = vmatprep.subr.bf16.mxu1 %v906_v0 }
 0xd7b   :  { %846 = vmatpush3.bf16.msra.mxu1 %v948_v2 }
 0xe36   :  { %v512_v12 = vpop.f32.mrf.mxu1 }
 0xe37   :  { %v525_v13 = vadd.f32 %v512_v12, %v968_v6  ;;  %v518_v1 = vadd.f32 %v751_v17, %v512_v12 }
 0xe38   :  { %v833_v14 = vpop.f32.mrf.mxu1 }
 0xe39   :  { %527 = vrot.lane.b32.xlu0 %v525_v13, %s908_s18  ;;  %v753_v18 = vmul.f32 -1.442695, %v518_v1 }
 0xe3a   :  { %v515_v15 = vpop.f32.mrf.mxu1 }
 0xe3b   :  { %888 = vpow2.f32 %v753_v18 }
 0xe3c   :  { %v834_v16 = vpop.f32.mrf.mxu1 }
 0xe48   :  { %v889_v19 = vpop.eup %888 }
 0xe49   :  { %v522_v20 = vadd.f32 1.0, %v889_v19 }
 0xe4b   :  { %890 = vrcp.f32 %v522_v20 }
 0xe58   :  { %v891_v0 = vpop.eup %890 }
 0xe59   :  { %v537_v26 = vsub.f32 1.0, %v891_v0 }
 0xeab   :  { %v528_v2 = vpop.permute.xlu0 %527 }
 0xeac   :  { %v530_v21 = vmul.f32 %v891_v0, %v528_v2 }
 0xeae   :  { %532 = vrot.lane.b32.xlu1 %v530_v21, %s908_s18 }
 0xeb2   :  { %544 = vrot.lane.b32.xlu1 %v471_v10, %s909_s1 }
 0xf20   :  { %v533_v22 = vpop.permute.xlu1 %532 }
 0xf21   :  { %v535_v23 = vadd.f32 %v751_v17, %v533_v22 }
 0xf23   :  { %892 = vtanh.f32 %v535_v23 }
 0xf24   :  { %v545_v25 = vpop.permute.xlu1 %544 }
 0xf25   :  { %v547_v28 = vmul.f32 %v891_v0, %v545_v25 }
 0xf30   :  { %v893_v24 = vpop.eup %892 }
 0xf31   :  { %539 = vrot.lane.b32.xlu0 %v893_v24, %s910_s20 }
 0xfa3   :  { %v540_v27 = vpop.permute.xlu0 %539 }
 0xfa4   :  { %v542_v29 = vmul.f32 %v540_v27, %v537_v26 }
 0xfa6   :  { %v548_v30 = vadd.f32 %v547_v28, %v542_v29 }
 0xfa8   :  { %550 = vrot.lane.b32.xlu0 %v548_v30, %s910_s20 }
0x101a   :  { %v551_v31 = vpop.permute.xlu0 %550 }
0x101b   :  { %553 = vst.msk [vmem:[#allocation2] sm:$0x3] %vm19_vm0, %v551_v31  ;;  %754 = vst.msk [vmem:[%s1120_s3 + $0xa] sm:$0x3] %vm19_vm0, %v551_v31 }
0x1022   :  { %v556_v32 = vld [vmem:[#allocation2] sm:$0x3] }
0x1023   :  { %v559_v33 = vpack.c.bf16 %v556_v32, %v556_v32 }
0x1025   :  { %840 = vmatmul.mubr.msk.bf16.vlgmr.msra.gmra.mxu0 %vm41_vm2, %v559_v33 }
0x10e5   :  { %v597_v34 = vpop.f32.mrf.mxu0 }
0x10e6   :  { %v610_v35 = vadd.f32 %v597_v34, %v968_v6  ;;  %v603_v40 = vadd.f32 %v755_v39, %v597_v34 }
0x10e7   :  { %v841_v36 = vpop.f32.mrf.mxu0 }
0x10e8   :  { %612 = vrot.lane.b32.xlu1 %v610_v35, %s908_s18  ;;  %v757_v41 = vmul.f32 -1.442695, %v603_v40 }
0x10e9   :  { %v600_v37 = vpop.f32.mrf.mxu0 }
0x10ea   :  { %894 = vpow2.f32 %v757_v41 }
0x10eb   :  { %v842_v38 = vpop.f32.mrf.mxu0 }
0x10f7   :  { %v895_v42 = vpop.eup %894 }
0x10f8   :  { %v607_v43 = vadd.f32 1.0, %v895_v42 }
0x10fa   :  { %896 = vrcp.f32 %v607_v43 }
0x1107   :  { %v897_v44 = vpop.eup %896 }
0x1108   :  { %v622_v51 = vsub.f32 1.0, %v897_v44 }
0x115a   :  { %v613_v45 = vpop.permute.xlu1 %612 }
0x115b   :  { %v615_v46 = vmul.f32 %v897_v44, %v613_v45 }
0x115d   :  { %617 = vrot.lane.b32.xlu0 %v615_v46, %s908_s18 }
0x1161   :  { %629 = vrot.lane.b32.xlu0 %v556_v32, %s909_s1 }
0x11cf   :  { %v618_v47 = vpop.permute.xlu0 %617 }
0x11d0   :  { %v620_v48 = vadd.f32 %v755_v39, %v618_v47 }
0x11d2   :  { %898 = vtanh.f32 %v620_v48 }
0x11d3   :  { %v630_v50 = vpop.permute.xlu0 %629 }
0x11d4   :  { %v632_v53 = vmul.f32 %v897_v44, %v630_v50 }
0x11df   :  { %v899_v49 = vpop.eup %898 }
0x11e0   :  { %624 = vrot.lane.b32.xlu1 %v899_v49, %s910_s20 }
0x1252   :  { %v625_v52 = vpop.permute.xlu1 %624 }
0x1253   :  { %v627_v54 = vmul.f32 %v625_v52, %v622_v51 }
0x1255   :  { %v633_v55 = vadd.f32 %v632_v53, %v627_v54 }
0x1257   :  { %635 = vrot.lane.b32.xlu1 %v633_v55, %s910_s20 }
0x12c9   :  { %v636_v56 = vpop.permute.xlu1 %635 }
0x12ca   :  { %638 = vst.msk [vmem:[#allocation2] sm:$0x3] %vm19_vm0, %v636_v56  ;;  %758 = vst.msk [vmem:[%s1120_s3 + $0xc] sm:$0x3] %vm19_vm0, %v636_v56 }
0x12d1   :  { %v641_v57 = vld [vmem:[#allocation2] sm:$0x3] }
0x12d2   :  { %v644_v58 = vpack.c.bf16 %v641_v57, %v641_v57 }
0x12d4   :  { %848 = vmatmul.mubr.msk.bf16.vlgmr.msra.gmra.mxu1 %vm41_vm2, %v644_v58 }
0x1394   :  { %v682_v59 = vpop.f32.mrf.mxu1 }
0x1395   :  { %v695_v60 = vadd.f32 %v682_v59, %v968_v6  ;;  %v688_v4 = vadd.f32 %v759_v3, %v682_v59 }
0x1396   :  { %v849_v61 = vpop.f32.mrf.mxu1 }
0x1397   :  { %697 = vrot.lane.b32.xlu0 %v695_v60, %s908_s18  ;;  %v761_v5 = vmul.f32 -1.442695, %v688_v4 }
0x1398   :  { %v685_v62 = vpop.f32.mrf.mxu1 }
0x1399   :  { %900 = vpow2.f32 %v761_v5 }
0x139a   :  { %v850_v63 = vpop.f32.mrf.mxu1 }
0x13a6   :  { %v901_v7 = vpop.eup %900 }
0x13a7   :  { %v692_v8 = vadd.f32 1.0, %v901_v7 }
0x13a9   :  { %902 = vrcp.f32 %v692_v8 }
0x13b6   :  { %v903_v9 = vpop.eup %902 }
0x13b7   :  { %v707_v15 = vsub.f32 1.0, %v903_v9 }
0x1409   :  { %v698_v10 = vpop.permute.xlu0 %697 }
0x140a   :  { %v700_v11 = vmul.f32 %v903_v9, %v698_v10 }
0x140c   :  { %702 = vrot.lane.b32.xlu1 %v700_v11, %s908_s18 }
0x1410   :  { %714 = vrot.lane.b32.xlu1 %v641_v57, %s909_s1 }
0x147e   :  { %v703_v6 = vpop.permute.xlu1 %702 }
0x147f   :  { %v705_v12 = vadd.f32 %v759_v3, %v703_v6 }
0x1481   :  { %904 = vtanh.f32 %v705_v12 }
0x1482   :  { %v715_v14 = vpop.permute.xlu1 %714 }
0x1483   :  { %v717_v17 = vmul.f32 %v903_v9, %v715_v14 }
0x148e   :  { %v905_v13 = vpop.eup %904 }
0x148f   :  { %709 = vrot.lane.b32.xlu0 %v905_v13, %s910_s20 }
0x1501   :  { %v710_v16 = vpop.permute.xlu0 %709 }
0x1502   :  { %v712_v1 = vmul.f32 %v710_v16, %v707_v15 }
0x1504   :  { %v718_v18 = vadd.f32 %v717_v17, %v712_v1 }
0x1506   :  { %720 = vrot.lane.b32.xlu0 %v718_v18, %s910_s20 }
0x1578   :  { %v721_v19 = vpop.permute.xlu0 %720 }
0x1579   :  { %723 = vst.msk [vmem:[#allocation2] sm:$0x3] %vm19_vm0, %v721_v19  ;;  %762 = vst.msk [vmem:[%s1120_s3 + $0xe] sm:$0x3] %vm19_vm0, %v721_v19 }

// kernel: gru_model_forward.8
= control target key start
LH: loop header
LB: loop body
LE: loop exit
PB: predicated region body
PF: predicated region fallthrough
CT: control target
= control target key end

     0   :  { %vm19_vm0 = vcmask 254976   ;;  %v886_v0 = vmov 0.0   ;;  %vm887_vm1 = vmmov 0   ;;  %s888_s18 = smov 64   ;;  %vm41_vm2 = vcmask 261120   ;;  %s890_s20 = smov 96   ;;  %s1069_s1 = inlined_call_operand.vmem [shape: bf16[32,96], index: 1, kind: input, shape index: {}]   ;;  %s1070_s2 = inlined_call_operand.vmem [shape: f32[1,32], index: 2, kind: input, shape index: {}]   ;;  %s1071_s0 = inlined_call_operand.vmem [shape: f32[8,2,96], index: 0, kind: input, shape index: {}]   ;;  %s1072_s3 = inlined_call_operand.vmem [shape: f32[2,32], index: 3, kind: output, shape index: {}]  }
   0x1   :  { %767 = vmatprep.subr.bf16.mxu0 %v886_v0  ;;  %v915_v1 = vld [vmem:[%s1069_s1 + $0x8] sm:$0xff]   ;;  %771 = vmatprep.mubr.msk.bf16.mxu0 %vm887_vm1, %v886_v0  ;;  %20 = vst.msk [vmem:[#allocation2] sm:$0x3] %vm19_vm0, %v886_v0  ;;  %v928_v2 = vld [vmem:[%s1069_s1] sm:$0xff]   ;;  %s889_s1 = smov 32  }
   0x2   :  { %775 = vmatprep.subr.bf16.mxu1 %v886_v0  ;;  %779 = vmatprep.mubr.msk.bf16.mxu1 %vm887_vm1, %v886_v0  ;;  %v721_v3 = vld [vmem:[%s1070_s2] ss:$0 sm:$0xff]  ;;  %v722_v37 = vld [vmem:[%s1071_s0 + $0x2] sm:$0x3]  ;;  %v725_v62 = vld [vmem:[%s1071_s0 + $0x4] sm:$0x3] }
   0x3   :  { %768 = vmatpush3.bf16.msra.mxu0 %v915_v1  ;;  %776 = vmatpush3.bf16.msra.mxu1 %v915_v1  ;;  %v27_v12 = vld [vmem:[%s1071_s0] sm:$0x3] }
   0x4   :  { %769 = vmatprep.subr.bf16.mxu0 %v886_v0  ;;  %97 = vrot.lane.b32.xlu0 %v721_v3, %s888_s18 }
   0x5   :  { %777 = vmatprep.subr.bf16.mxu1 %v886_v0 }
   0x7   :  { %770 = vmatpush3.bf16.msra.mxu0 %v928_v2  ;;  %778 = vmatpush3.bf16.msra.mxu1 %v928_v2 }
   0x8   :  { %v26_v4 = vld [vmem:[#allocation2] sm:$0x3]  ;;  %783 = vmatprep.subr.bf16.mxu0 %v886_v0  ;;  %791 = vmatprep.subr.bf16.mxu1 %v886_v0 }
   0x9   :  { %v28_v5 = vpack.c.bf16 %v26_v4, %v26_v4 }
   0xb   :  { %772 = vmatmul.mubr.msk.bf16.vlgmr.msra.gmra.mxu0 %vm41_vm2, %v28_v5 }
   0xc   :  { %784 = vmatpush3.bf16.msra.mxu0 %v915_v1  ;;  %787 = vmatprep.mubr.msk.bf16.mxu0 %vm887_vm1, %v886_v0 }
   0xd   :  { %785 = vmatprep.subr.bf16.mxu0 %v886_v0 }
  0x10   :  { %786 = vmatpush3.bf16.msra.mxu0 %v928_v2 }
  0x11   :  { %799 = vmatprep.subr.bf16.mxu0 %v886_v0 }
  0x76   :  { %v948_v6 = vpop.permute.xlu0 %97 }
  0xcb   :  { %v79_v7 = vpop.f32.mrf.mxu0 }
  0xcc   :  { %v100_v8 = vadd.f32 %v948_v6, %v79_v7  ;;  %v85_v13 = vadd.f32 %v79_v7, %v27_v12 }
  0xcd   :  { %v773_v9 = vpop.f32.mrf.mxu0 }
  0xce   :  { %102 = vrot.lane.b32.xlu0 %v100_v8, %s888_s18  ;;  %v720_v14 = vmul.f32 -1.442695, %v85_v13 }
  0xcf   :  { %v82_v10 = vpop.f32.mrf.mxu0 }
  0xd0   :  { %838 = vpow2.f32 %v720_v14 }
  0xd1   :  { %v774_v11 = vpop.f32.mrf.mxu0 }
  0xd2   :  { %119 = vrot.lane.b32.xlu0 %v26_v4, %s889_s1 }
  0xdd   :  { %v839_v15 = vpop.eup %838 }
  0xde   :  { %v89_v16 = vadd.f32 1.0, %v839_v15 }
  0xe0   :  { %840 = vrcp.f32 %v89_v16 }
  0xed   :  { %v841_v17 = vpop.eup %840 }
  0xee   :  { %v112_v24 = vsub.f32 1.0, %v841_v17 }
 0x140   :  { %v103_v18 = vpop.permute.xlu0 %102 }
 0x141   :  { %v105_v19 = vmul.f32 %v841_v17, %v103_v18 }
 0x143   :  { %107 = vrot.lane.b32.xlu1 %v105_v19, %s888_s18 }
 0x144   :  { %v120_v23 = vpop.permute.xlu0 %119 }
 0x145   :  { %v122_v26 = vmul.f32 %v841_v17, %v120_v23 }
 0x1b5   :  { %v108_v20 = vpop.permute.xlu1 %107 }
 0x1b6   :  { %v110_v21 = vadd.f32 %v108_v20, %v27_v12 }
 0x1b8   :  { %842 = vtanh.f32 %v110_v21 }
 0x1c5   :  { %v843_v22 = vpop.eup %842 }
 0x1c6   :  { %114 = vrot.lane.b32.xlu1 %v843_v22, %s890_s20 }
 0x238   :  { %v115_v25 = vpop.permute.xlu1 %114 }
 0x239   :  { %v117_v27 = vmul.f32 %v115_v25, %v112_v24 }
 0x23b   :  { %v123_v28 = vadd.f32 %v122_v26, %v117_v27  ;;  %v728_v27 = vld [vmem:[%s1071_s0 + $0x6] sm:$0x3] }
 0x23d   :  { %125 = vrot.lane.b32.xlu1 %v123_v28, %s890_s20 }
 0x2af   :  { %v126_v29 = vpop.permute.xlu1 %125 }
 0x2b0   :  { %129 = vst.msk [vmem:[#allocation2] sm:$0x3] %vm19_vm0, %v126_v29 }
 0x2b7   :  { %v130_v30 = vld [vmem:[#allocation2] sm:$0x3] }
 0x2b8   :  { %v133_v31 = vpack.c.bf16 %v130_v30, %v130_v30 }
 0x2ba   :  { %780 = vmatmul.mubr.msk.bf16.vlgmr.msra.gmra.mxu1 %vm41_vm2, %v133_v31 }
 0x2bb   :  { %792 = vmatpush3.bf16.msra.mxu1 %v915_v1  ;;  %795 = vmatprep.mubr.msk.bf16.mxu1 %vm887_vm1, %v886_v0 }
 0x2bc   :  { %793 = vmatprep.subr.bf16.mxu1 %v886_v0 }
 0x2bf   :  { %794 = vmatpush3.bf16.msra.mxu1 %v928_v2 }
 0x2c0   :  { %807 = vmatprep.subr.bf16.mxu1 %v886_v0 }
 0x37a   :  { %v171_v32 = vpop.f32.mrf.mxu1 }
 0x37b   :  { %v184_v33 = vadd.f32 %v171_v32, %v948_v6  ;;  %v177_v38 = vadd.f32 %v722_v37, %v171_v32 }
 0x37c   :  { %v781_v34 = vpop.f32.mrf.mxu1 }
 0x37d   :  { %186 = vrot.lane.b32.xlu0 %v184_v33, %s888_s18  ;;  %v724_v39 = vmul.f32 -1.442695, %v177_v38 }
 0x37e   :  { %v174_v35 = vpop.f32.mrf.mxu1 }
 0x37f   :  { %844 = vpow2.f32 %v724_v39 }
 0x380   :  { %v782_v36 = vpop.f32.mrf.mxu1 }
 0x38c   :  { %v845_v40 = vpop.eup %844 }
 0x38d   :  { %v181_v41 = vadd.f32 1.0, %v845_v40 }
 0x38f   :  { %846 = vrcp.f32 %v181_v41 }
 0x39c   :  { %v847_v42 = vpop.eup %846 }
 0x39d   :  { %v196_v49 = vsub.f32 1.0, %v847_v42 }
 0x3ef   :  { %v187_v43 = vpop.permute.xlu0 %186 }
 0x3f0   :  { %v189_v44 = vmul.f32 %v847_v42, %v187_v43 }
 0x3f2   :  { %191 = vrot.lane.b32.xlu1 %v189_v44, %s888_s18 }
 0x3f6   :  { %203 = vrot.lane.b32.xlu1 %v130_v30, %s889_s1 }
 0x464   :  { %v192_v45 = vpop.permute.xlu1 %191 }
 0x465   :  { %v194_v46 = vadd.f32 %v722_v37, %v192_v45 }
 0x467   :  { %848 = vtanh.f32 %v194_v46 }
 0x468   :  { %v204_v48 = vpop.permute.xlu1 %203 }
 0x469   :  { %v206_v51 = vmul.f32 %v847_v42, %v204_v48 }
 0x474   :  { %v849_v47 = vpop.eup %848 }
 0x475   :  { %198 = vrot.lane.b32.xlu0 %v849_v47, %s890_s20 }
 0x4e7   :  { %v199_v50 = vpop.permute.xlu0 %198 }
 0x4e8   :  { %v201_v52 = vmul.f32 %v199_v50, %v196_v49 }
 0x4ea   :  { %v207_v53 = vadd.f32 %v206_v51, %v201_v52  ;;  %v731_v52 = vld [vmem:[%s1071_s0 + $0x8] sm:$0x3] }
 0x4ec   :  { %209 = vrot.lane.b32.xlu0 %v207_v53, %s890_s20 }
 0x55e   :  { %v210_v54 = vpop.permute.xlu0 %209 }
 0x55f   :  { %212 = vst.msk [vmem:[#allocation2] sm:$0x3] %vm19_vm0, %v210_v54 }
 0x566   :  { %v213_v55 = vld [vmem:[#allocation2] sm:$0x3] }
 0x567   :  { %v216_v56 = vpack.c.bf16 %v213_v55, %v213_v55 }
 0x569   :  { %788 = vmatmul.mubr.msk.bf16.vlgmr.msra.gmra.mxu0 %vm41_vm2, %v216_v56 }
 0x56a   :  { %800 = vmatpush3.bf16.msra.mxu0 %v915_v1  ;;  %803 = vmatprep.mubr.msk.bf16.mxu0 %vm887_vm1, %v886_v0 }
 0x56b   :  { %801 = vmatprep.subr.bf16.mxu0 %v886_v0 }
 0x56e   :  { %802 = vmatpush3.bf16.msra.mxu0 %v928_v2 }
 0x56f   :  { %815 = vmatprep.subr.bf16.mxu0 %v886_v0 }
 0x629   :  { %v254_v57 = vpop.f32.mrf.mxu0 }
 0x62a   :  { %v267_v58 = vadd.f32 %v254_v57, %v948_v6  ;;  %v260_v63 = vadd.f32 %v725_v62, %v254_v57 }
 0x62b   :  { %v789_v59 = vpop.f32.mrf.mxu0 }
 0x62c   :  { %269 = vrot.lane.b32.xlu1 %v267_v58, %s888_s18  ;;  %v727_v3 = vmul.f32 -1.442695, %v260_v63 }
 0x62d   :  { %v257_v60 = vpop.f32.mrf.mxu0 }
 0x62e   :  { %850 = vpow2.f32 %v727_v3 }
 0x62f   :  { %v790_v61 = vpop.f32.mrf.mxu0 }
 0x63b   :  { %v851_v4 = vpop.eup %850 }
 0x63c   :  { %v264_v5 = vadd.f32 1.0, %v851_v4 }
 0x63e   :  { %852 = vrcp.f32 %v264_v5 }
 0x64b   :  { %v853_v7 = vpop.eup %852 }
 0x64c   :  { %v279_v14 = vsub.f32 1.0, %v853_v7 }
 0x69e   :  { %v270_v8 = vpop.permute.xlu1 %269 }
 0x69f   :  { %v272_v9 = vmul.f32 %v853_v7, %v270_v8 }
 0x6a1   :  { %274 = vrot.lane.b32.xlu0 %v272_v9, %s888_s18 }
 0x6a5   :  { %286 = vrot.lane.b32.xlu0 %v213_v55, %s889_s1 }
 0x713   :  { %v275_v10 = vpop.permute.xlu0 %274 }
 0x714   :  { %v277_v11 = vadd.f32 %v725_v62, %v275_v10 }
 0x716   :  { %854 = vtanh.f32 %v277_v11 }
 0x717   :  { %v287_v13 = vpop.permute.xlu0 %286 }
 0x718   :  { %v289_v16 = vmul.f32 %v853_v7, %v287_v13 }
 0x723   :  { %v855_v12 = vpop.eup %854 }
 0x724   :  { %281 = vrot.lane.b32.xlu1 %v855_v12, %s890_s20 }
 0x796   :  { %v282_v15 = vpop.permute.xlu1 %281 }
 0x797   :  { %v284_v17 = vmul.f32 %v282_v15, %v279_v14 }
 0x799   :  { %v290_v18 = vadd.f32 %v289_v16, %v284_v17  ;;  %v734_v17 = vld [vmem:[%s1071_s0 + $0xa] sm:$0x3] }
 0x79b   :  { %292 = vrot.lane.b32.xlu1 %v290_v18, %s890_s20 }
 0x80d   :  { %v293_v19 = vpop.permute.xlu1 %292 }
 0x80e   :  { %295 = vst.msk [vmem:[#allocation2] sm:$0x3] %vm19_vm0, %v293_v19 }
 0x815   :  { %v296_v20 = vld [vmem:[#allocation2] sm:$0x3] }
 0x816   :  { %v299_v21 = vpack.c.bf16 %v296_v20, %v296_v20 }
 0x818   :  { %796 = vmatmul.mubr.msk.bf16.vlgmr.msra.gmra.mxu1 %vm41_vm2, %v299_v21 }
 0x819   :  { %808 = vmatpush3.bf16.msra.mxu1 %v915_v1  ;;  %811 = vmatprep.mubr.msk.bf16.mxu1 %vm887_vm1, %v886_v0 }
 0x81a   :  { %809 = vmatprep.subr.bf16.mxu1 %v886_v0 }
 0x81d   :  { %810 = vmatpush3.bf16.msra.mxu1 %v928_v2 }
 0x81e   :  { %823 = vmatprep.subr.bf16.mxu1 %v886_v0 }
 0x8d8   :  { %v337_v22 = vpop.f32.mrf.mxu1 }
 0x8d9   :  { %v350_v23 = vadd.f32 %v337_v22, %v948_v6  ;;  %v343_v28 = vadd.f32 %v728_v27, %v337_v22 }
 0x8da   :  { %v797_v24 = vpop.f32.mrf.mxu1 }
 0x8db   :  { %352 = vrot.lane.b32.xlu0 %v350_v23, %s888_s18  ;;  %v730_v29 = vmul.f32 -1.442695, %v343_v28 }
 0x8dc   :  { %v340_v25 = vpop.f32.mrf.mxu1 }
 0x8dd   :  { %856 = vpow2.f32 %v730_v29 }
 0x8de   :  { %v798_v26 = vpop.f32.mrf.mxu1 }
 0x8ea   :  { %v857_v30 = vpop.eup %856 }
 0x8eb   :  { %v347_v31 = vadd.f32 1.0, %v857_v30 }
 0x8ed   :  { %858 = vrcp.f32 %v347_v31 }
 0x8fa   :  { %v859_v32 = vpop.eup %858 }
 0x8fb   :  { %v362_v39 = vsub.f32 1.0, %v859_v32 }
 0x94d   :  { %v353_v33 = vpop.permute.xlu0 %352 }
 0x94e   :  { %v355_v34 = vmul.f32 %v859_v32, %v353_v33 }
 0x950   :  { %357 = vrot.lane.b32.xlu1 %v355_v34, %s888_s18 }
 0x954   :  { %369 = vrot.lane.b32.xlu1 %v296_v20, %s889_s1 }
 0x9c2   :  { %v358_v35 = vpop.permute.xlu1 %357 }
 0x9c3   :  { %v360_v36 = vadd.f32 %v728_v27, %v358_v35 }
 0x9c5   :  { %860 = vtanh.f32 %v360_v36 }
 0x9c6   :  { %v370_v38 = vpop.permute.xlu1 %369 }
 0x9c7   :  { %v372_v41 = vmul.f32 %v859_v32, %v370_v38 }
 0x9d2   :  { %v861_v37 = vpop.eup %860 }
 0x9d3   :  { %364 = vrot.lane.b32.xlu0 %v861_v37, %s890_s20 }
 0xa45   :  { %v365_v40 = vpop.permute.xlu0 %364 }
 0xa46   :  { %v367_v42 = vmul.f32 %v365_v40, %v362_v39  ;;  %v737_v39 = vld [vmem:[%s1071_s0 + $0xc] sm:$0x3] }
 0xa48   :  { %v373_v43 = vadd.f32 %v372_v41, %v367_v42 }
 0xa4a   :  { %375 = vrot.lane.b32.xlu0 %v373_v43, %s890_s20 }
 0xabc   :  { %v376_v44 = vpop.permute.xlu0 %375 }
 0xabd   :  { %378 = vst.msk [vmem:[#allocation2] sm:$0x3] %vm19_vm0, %v376_v44 }
 0xac4   :  { %v379_v45 = vld [vmem:[#allocation2] sm:$0x3] }
 0xac5   :  { %v382_v46 = vpack.c.bf16 %v379_v45, %v379_v45 }
 0xac7   :  { %804 = vmatmul.mubr.msk.bf16.vlgmr.msra.gmra.mxu0 %vm41_vm2, %v382_v46 }
 0xac8   :  { %816 = vmatpush3.bf16.msra.mxu0 %v915_v1  ;;  %819 = vmatprep.mubr.msk.bf16.mxu0 %vm887_vm1, %v886_v0 }
 0xac9   :  { %817 = vmatprep.subr.bf16.mxu0 %v886_v0 }
 0xacc   :  { %818 = vmatpush3.bf16.msra.mxu0 %v928_v2 }
 0xb87   :  { %v420_v47 = vpop.f32.mrf.mxu0 }
 0xb88   :  { %v433_v48 = vadd.f32 %v420_v47, %v948_v6  ;;  %v426_v53 = vadd.f32 %v731_v52, %v420_v47 }
 0xb89   :  { %v805_v49 = vpop.f32.mrf.mxu0 }
 0xb8a   :  { %435 = vrot.lane.b32.xlu1 %v433_v48, %s888_s18  ;;  %v733_v54 = vmul.f32 -1.442695, %v426_v53 }
 0xb8b   :  { %v423_v50 = vpop.f32.mrf.mxu0 }
 0xb8c   :  { %862 = vpow2.f32 %v733_v54 }
 0xb8d   :  { %v806_v51 = vpop.f32.mrf.mxu0 }
 0xb99   :  { %v863_v55 = vpop.eup %862 }
 0xb9a   :  { %v430_v56 = vadd.f32 1.0, %v863_v55 }
 0xb9c   :  { %864 = vrcp.f32 %v430_v56 }
 0xba9   :  { %v865_v57 = vpop.eup %864 }
 0xbaa   :  { %v445_v3 = vsub.f32 1.0, %v865_v57 }
 0xbfc   :  { %v436_v58 = vpop.permute.xlu1 %435 }
 0xbfd   :  { %v438_v59 = vmul.f32 %v865_v57, %v436_v58 }
 0xbff   :  { %440 = vrot.lane.b32.xlu0 %v438_v59, %s888_s18 }
 0xc03   :  { %452 = vrot.lane.b32.xlu0 %v379_v45, %s889_s1 }
 0xc71   :  { %v441_v60 = vpop.permute.xlu0 %440 }
 0xc72   :  { %v443_v61 = vadd.f32 %v731_v52, %v441_v60 }
 0xc74   :  { %866 = vtanh.f32 %v443_v61 }
 0xc75   :  { %v453_v63 = vpop.permute.xlu0 %452 }
 0xc76   :  { %v455_v5 = vmul.f32 %v865_v57, %v453_v63 }
 0xc81   :  { %v867_v62 = vpop.eup %866 }
 0xc82   :  { %447 = vrot.lane.b32.xlu1 %v867_v62, %s890_s20 }
 0xcf4   :  { %v448_v4 = vpop.permute.xlu1 %447 }
 0xcf5   :  { %v450_v7 = vmul.f32 %v448_v4, %v445_v3  ;;  %v740_v3 = vld [vmem:[%s1071_s0 + $0xe] sm:$0x3] }
 0xcf7   :  { %v456_v8 = vadd.f32 %v455_v5, %v450_v7 }
 0xcf9   :  { %458 = vrot.lane.b32.xlu1 %v456_v8, %s890_s20 }
 0xd6b   :  { %v459_v9 = vpop.permute.xlu1 %458 }
 0xd6c   :  { %461 = vst.msk [vmem:[#allocation2] sm:$0x3] %vm19_vm0, %v459_v9 }
 0xd73   :  { %v462_v10 = vld [vmem:[#allocation2] sm:$0x3] }
 0xd74   :  { %v465_v11 = vpack.c.bf16 %v462_v10, %v462_v10 }
 0xd76   :  { %812 = vmatmul.mubr.msk.bf16.vlgmr.msra.gmra.mxu1 %vm41_vm2, %v465_v11 }
 0xd77   :  { %824 = vmatpush3.bf16.msra.mxu1 %v915_v1  ;;  %827 = vmatprep.mubr.msk.bf16.mxu1 %vm887_vm1, %v886_v0 }
 0xd78   :  { %825 = vmatprep.subr.bf16.mxu1 %v886_v0 }
 0xd7b   :  { %826 = vmatpush3.bf16.msra.mxu1 %v928_v2 }
 0xe36   :  { %v503_v12 = vpop.f32.mrf.mxu1 }
 0xe37   :  { %v516_v13 = vadd.f32 %v503_v12, %v948_v6  ;;  %v509_v1 = vadd.f32 %v734_v17, %v503_v12 }
 0xe38   :  { %v813_v14 = vpop.f32.mrf.mxu1 }
 0xe39   :  { %518 = vrot.lane.b32.xlu0 %v516_v13, %s888_s18  ;;  %v736_v18 = vmul.f32 -1.442695, %v509_v1 }
 0xe3a   :  { %v506_v15 = vpop.f32.mrf.mxu1 }
 0xe3b   :  { %868 = vpow2.f32 %v736_v18 }
 0xe3c   :  { %v814_v16 = vpop.f32.mrf.mxu1 }
 0xe48   :  { %v869_v19 = vpop.eup %868 }
 0xe49   :  { %v513_v20 = vadd.f32 1.0, %v869_v19 }
 0xe4b   :  { %870 = vrcp.f32 %v513_v20 }
 0xe58   :  { %v871_v0 = vpop.eup %870 }
 0xe59   :  { %v528_v26 = vsub.f32 1.0, %v871_v0 }
 0xeab   :  { %v519_v2 = vpop.permute.xlu0 %518 }
 0xeac   :  { %v521_v21 = vmul.f32 %v871_v0, %v519_v2 }
 0xeae   :  { %523 = vrot.lane.b32.xlu1 %v521_v21, %s888_s18 }
 0xeb2   :  { %535 = vrot.lane.b32.xlu1 %v462_v10, %s889_s1 }
 0xf20   :  { %v524_v22 = vpop.permute.xlu1 %523 }
 0xf21   :  { %v526_v23 = vadd.f32 %v734_v17, %v524_v22 }
 0xf23   :  { %872 = vtanh.f32 %v526_v23 }
 0xf24   :  { %v536_v25 = vpop.permute.xlu1 %535 }
 0xf25   :  { %v538_v28 = vmul.f32 %v871_v0, %v536_v25 }
 0xf30   :  { %v873_v24 = vpop.eup %872 }
 0xf31   :  { %530 = vrot.lane.b32.xlu0 %v873_v24, %s890_s20 }
 0xfa3   :  { %v531_v27 = vpop.permute.xlu0 %530 }
 0xfa4   :  { %v533_v29 = vmul.f32 %v531_v27, %v528_v26 }
 0xfa6   :  { %v539_v30 = vadd.f32 %v538_v28, %v533_v29 }
 0xfa8   :  { %541 = vrot.lane.b32.xlu0 %v539_v30, %s890_s20 }
0x101a   :  { %v542_v31 = vpop.permute.xlu0 %541 }
0x101b   :  { %544 = vst.msk [vmem:[#allocation2] sm:$0x3] %vm19_vm0, %v542_v31 }
0x1022   :  { %v545_v32 = vld [vmem:[#allocation2] sm:$0x3] }
0x1023   :  { %v548_v33 = vpack.c.bf16 %v545_v32, %v545_v32 }
0x1025   :  { %820 = vmatmul.mubr.msk.bf16.vlgmr.msra.gmra.mxu0 %vm41_vm2, %v548_v33 }
0x10e5   :  { %v586_v34 = vpop.f32.mrf.mxu0 }
0x10e6   :  { %v599_v35 = vadd.f32 %v586_v34, %v948_v6  ;;  %v592_v40 = vadd.f32 %v737_v39, %v586_v34 }
0x10e7   :  { %v821_v36 = vpop.f32.mrf.mxu0 }
0x10e8   :  { %601 = vrot.lane.b32.xlu1 %v599_v35, %s888_s18  ;;  %v739_v41 = vmul.f32 -1.442695, %v592_v40 }
0x10e9   :  { %v589_v37 = vpop.f32.mrf.mxu0 }
0x10ea   :  { %874 = vpow2.f32 %v739_v41 }
0x10eb   :  { %v822_v38 = vpop.f32.mrf.mxu0 }
0x10f7   :  { %v875_v42 = vpop.eup %874 }
0x10f8   :  { %v596_v43 = vadd.f32 1.0, %v875_v42 }
0x10fa   :  { %876 = vrcp.f32 %v596_v43 }
0x1107   :  { %v877_v44 = vpop.eup %876 }
0x1108   :  { %v611_v51 = vsub.f32 1.0, %v877_v44 }
0x115a   :  { %v602_v45 = vpop.permute.xlu1 %601 }
0x115b   :  { %v604_v46 = vmul.f32 %v877_v44, %v602_v45 }
0x115d   :  { %606 = vrot.lane.b32.xlu0 %v604_v46, %s888_s18 }
0x1161   :  { %618 = vrot.lane.b32.xlu0 %v545_v32, %s889_s1 }
0x11cf   :  { %v607_v47 = vpop.permute.xlu0 %606 }
0x11d0   :  { %v609_v48 = vadd.f32 %v737_v39, %v607_v47 }
0x11d2   :  { %878 = vtanh.f32 %v609_v48 }
0x11d3   :  { %v619_v50 = vpop.permute.xlu0 %618 }
0x11d4   :  { %v621_v53 = vmul.f32 %v877_v44, %v619_v50 }
0x11df   :  { %v879_v49 = vpop.eup %878 }
0x11e0   :  { %613 = vrot.lane.b32.xlu1 %v879_v49, %s890_s20 }
0x1252   :  { %v614_v52 = vpop.permute.xlu1 %613 }
0x1253   :  { %v616_v54 = vmul.f32 %v614_v52, %v611_v51 }
0x1255   :  { %v622_v55 = vadd.f32 %v621_v53, %v616_v54 }
0x1257   :  { %624 = vrot.lane.b32.xlu1 %v622_v55, %s890_s20 }
0x12c9   :  { %v625_v56 = vpop.permute.xlu1 %624 }
0x12ca   :  { %627 = vst.msk [vmem:[#allocation2] sm:$0x3] %vm19_vm0, %v625_v56 }
0x12d1   :  { %v628_v57 = vld [vmem:[#allocation2] sm:$0x3] }
0x12d2   :  { %v631_v58 = vpack.c.bf16 %v628_v57, %v628_v57 }
0x12d4   :  { %828 = vmatmul.mubr.msk.bf16.vlgmr.msra.gmra.mxu1 %vm41_vm2, %v631_v58 }
0x1394   :  { %v669_v59 = vpop.f32.mrf.mxu1 }
0x1395   :  { %v682_v60 = vadd.f32 %v669_v59, %v948_v6  ;;  %v675_v4 = vadd.f32 %v740_v3, %v669_v59 }
0x1396   :  { %v829_v61 = vpop.f32.mrf.mxu1 }
0x1397   :  { %684 = vrot.lane.b32.xlu0 %v682_v60, %s888_s18  ;;  %v742_v5 = vmul.f32 -1.442695, %v675_v4 }
0x1398   :  { %v672_v62 = vpop.f32.mrf.mxu1 }
0x1399   :  { %880 = vpow2.f32 %v742_v5 }
0x139a   :  { %v830_v63 = vpop.f32.mrf.mxu1 }
0x13a6   :  { %v881_v7 = vpop.eup %880 }
0x13a7   :  { %v679_v8 = vadd.f32 1.0, %v881_v7 }
0x13a9   :  { %882 = vrcp.f32 %v679_v8 }
0x13b6   :  { %v883_v9 = vpop.eup %882 }
0x13b7   :  { %v694_v15 = vsub.f32 1.0, %v883_v9 }
0x1409   :  { %v685_v10 = vpop.permute.xlu0 %684 }
0x140a   :  { %v687_v11 = vmul.f32 %v883_v9, %v685_v10 }
0x140c   :  { %689 = vrot.lane.b32.xlu1 %v687_v11, %s888_s18 }
0x1410   :  { %701 = vrot.lane.b32.xlu1 %v628_v57, %s889_s1 }
0x147e   :  { %v690_v6 = vpop.permute.xlu1 %689 }
0x147f   :  { %v692_v12 = vadd.f32 %v740_v3, %v690_v6 }
0x1481   :  { %884 = vtanh.f32 %v692_v12 }
0x1482   :  { %v702_v14 = vpop.permute.xlu1 %701 }
0x1483   :  { %v704_v17 = vmul.f32 %v883_v9, %v702_v14 }
0x148e   :  { %v885_v13 = vpop.eup %884 }
0x148f   :  { %696 = vrot.lane.b32.xlu0 %v885_v13, %s890_s20 }
0x1501   :  { %v697_v16 = vpop.permute.xlu0 %696 }
0x1502   :  { %v699_v1 = vmul.f32 %v697_v16, %v694_v15 }
0x1504   :  { %v705_v18 = vadd.f32 %v704_v17, %v699_v1 }
0x1506   :  { %707 = vrot.lane.b32.xlu0 %v705_v18, %s890_s20 }
0x1578   :  { %v708_v19 = vpop.permute.xlu0 %707 }
0x1579   :  { %710 = vst.msk [vmem:[#allocation2] sm:$0x3] %vm19_vm0, %v708_v19 }
0x1580   :  { %v711_v20 = vld [vmem:[#allocation2] sm:$0x3] }
0x1581   :  { %712 = vst.msk [vmem:[%s1072_s3] sm:$0x3] %vm19_vm0, %v711_v20 }

// kernel: gru_model_forward.9
= control target key start
LH: loop header
LB: loop body
LE: loop exit
PB: predicated region body
PF: predicated region fallthrough
CT: control target
= control target key end

     0   :  { %v160_v1 = vmov 0.0   ;;  %vm161_vm0 = vmmov 0   ;;  %s204_s0 = inlined_call_operand.vmem [shape: f32[2,32], index: 0, kind: input, shape index: {}]   ;;  %s205_s1 = inlined_call_operand.vmem [shape: f32[32,4], index: 1, kind: input, shape index: {}]   ;;  %s206_s2 = inlined_call_operand.vmem [shape: f32[1,4], index: 2, kind: input, shape index: {}]   ;;  %s207_s3 = inlined_call_operand.hbm [shape: f32[2,4], index: 3, kind: output, shape index: {}]  }
   0x1   :  { %v19_v0 = vld [vmem:[%s205_s1 + $0x18] sm:$0xff]  ;;  %124 = vmatprep.subr.mxu0 %v160_v1  ;;  %v18_v2 = vld [vmem:[%s205_s1 + $0x10] sm:$0xff]  ;;  %132 = vmatprep.mubr.msk.f32.mxu0 %vm161_vm0, %v160_v1 }
   0x2   :  { %125 = vmatpush3.msra.mxu0 %v19_v0 }
   0x3   :  { %8 = vsyncpa [#allocation3], 0  ;;  %126 = vmatprep.subr.mxu0 %v160_v1  ;;  %v17_v3 = vld [vmem:[%s205_s1 + $0x8] sm:$0xff]  ;;  %v16_v4 = vld [vmem:[%s205_s1] sm:$0xff]  ;;  %vm27_vm1 = vcmask 261120   ;;  %s162_s24 = smov [#allocation2]  }
   0x4   :  { %127 = vmatpush3.msra.mxu0 %v18_v2  ;;  %v15_v5 = vld [vmem:[%s204_s0] sm:$0x3]  ;;  %s109_s25 = sshll.u32 %s162_s24, 4  ;;  %vm101_vm2 = vcmask 25600   ;;  %s110_s25 = int_to_ptr.vmem [resolvable:$true] %s109_s25 }
   0x5   :  { %128 = vmatprep.subr.mxu0 %v160_v1  ;;  %v117_v6 = vld [vmem:[%s206_s2] ss:$0 sm:$0xff]  ;;  %s138_s1 = scalar_lea.vmem %s110_s25, 32  ;;  %p143_p1 = scmp.lt.s32.totalorder %s110_s25, %s110_s25 }
   0x6   :  { %129 = vmatpush3.msra.mxu0 %v17_v3  ;;  %p139_p0 = scmp.ne.s32.totalorder %s110_s25, %s138_s1  ;;  %p144_p2 = scmp.lt.s32.totalorder %s138_s1, %s138_s1 }
   0x7   :  { %130 = vmatprep.subr.mxu0 %v160_v1 }
   0x8   :  { %131 = vmatpush3.msra.mxu0 %v16_v4  ;;  %p145_p3 = por %p144_p2, %p143_p1 }
   0x9   :  { %133 = vmatmul.mubr.msk.f32.vlgmr.msra.gmra.mxu0 %vm27_vm1, %v15_v5 }
   0xa   :  { %p146_p4 = pnand %p145_p3, %p139_p0 }
  0xc9   :  { %v97_v7 = vpop.f32.mrf.mxu0 }
  0xca   :  { %v98_v8 = vadd.f32 %v117_v6, %v97_v7 }
  0xcb   :  { %v134_v9 = vpop.f32.mrf.mxu0 }
  0xcc   :  { %102 = vst.msk [vmem:[#allocation2] sm:$0x3] %vm101_vm2, %v98_v8 }
  0xcd   :  { %149 = shalt.err (!%p146_p4)
}
  0xce   :  { %112 = dma.vmem_to_hbm [thread:$0]  %s110_s25, 32, %s207_s3, [#allocation3]  }
  0xcf   :  { %158 = dma.done.wait [#allocation3], 32  }
  0xd0   :  { %159 = vsyncadd [#allocation3], 4294967264 }
  0xd1   :  { %116 = vsyncpa [#allocation3], 1 }

</bundles_post_ra>
